<compile_context>
chip_gen: v6e
topology: v6e:2x2x1
jax: 0.10.0
libtpu: 0.0.40
codegen_flags: <defaults>
</compile_context>

<pallas_src>
import functools

import jax
import jax.numpy as jnp
from jax import lax
from jax.experimental import pallas as pl
from jax.experimental.pallas import tpu as pltpu

# ----------------------------------------------------------------------------
# Module configuration (mirrors InvertedResidual(inp, oup, stride, expand_ratio))
# ----------------------------------------------------------------------------
INP = 32
OUP = 32
STRIDE = 1
EXPAND_RATIO = 4
HID = int(round(INP * EXPAND_RATIO))
USE_RES = (STRIDE == 1) and (INP == OUP)

N, H, W = 2, 16, 16
BN_EPS = 1e-5

# Halo padding of the expanded activation inside the VMEM scratch. The interior
# starts at sublane offset PAD_L=8 so its store is tile-aligned; the 3x3 taps
# read column windows starting at PAD_L-1, PAD_L, PAD_L+1.
PAD_L = 8
PAD_R = 8


def _fold_bn(gamma, beta, mean, var):
    """Fold BatchNorm (eval mode) into per-channel scale/bias."""
    scale = gamma / jnp.sqrt(var + BN_EPS)
    bias = beta - mean * scale
    return scale, bias


# ----------------------------------------------------------------------------
# Fused Pallas kernel: whole InvertedResidual block for one batch image
# ----------------------------------------------------------------------------
def _fused_kernel(x_ref, w1_ref, b1_ref, wdw_ref, b2_ref, w2_ref, b3_ref,
                  o_ref, hp_ref, *, h, w, hb, expand, use_res):
    """
    x_ref   : (1, h*w, INP)   input image, channels-last, flattened HW (f32)
    w1_ref  : (INP, HID)      1x1 expand weight, BN1 scale folded in (bf16)
    b1_ref  : (1, HID)        BN1 bias (f32)
    wdw_ref : (9, HID)        3x3 depthwise weight, BN2 scale folded in (f32)
    b2_ref  : (1, HID)        BN2 bias (f32)
    w2_ref  : (HID, OUP)      1x1 project weight, BN3 scale folded in (bf16)
    b3_ref  : (1, OUP)        BN3 bias (f32)
    o_ref   : (1, h*w, OUP)   block output (f32)
    hp_ref  : (h+2, PAD_L+w+PAD_R, HID)  VMEM scratch: zero-padded expanded
                               activation (provides the 3x3 halo).
    """
    padw = PAD_L + w + PAD_R

    # --- zero ONLY the read halo (aligned band stores), every grid step so it
    # stays correct under megacore grid sharding --------------------------------
    hp_ref[0:1, :, :] = jnp.zeros((1, padw, HID), jnp.float32)          # top row
    hp_ref[h + 1:h + 2, :, :] = jnp.zeros((1, padw, HID), jnp.float32)  # bottom
    hp_ref[1:h + 1, 0:PAD_L, :] = jnp.zeros((h, PAD_L, HID), jnp.float32)
    hp_ref[1:h + 1, PAD_L + w:padw, :] = jnp.zeros((h, PAD_R, HID), jnp.float32)

    # --- 1x1 expand conv + folded BN + ReLU (bf16 MXU feed, f32 accumulate) ----
    x2d = x_ref[0]                                         # (h*w, INP) f32
    if expand:
        h1 = jnp.dot(x2d.astype(jnp.bfloat16), w1_ref[...],
                     preferred_element_type=jnp.float32)
        h1 = jnp.maximum(h1 + b1_ref[...], 0.0)            # (h*w, HID) f32
    else:
        h1 = x2d.astype(jnp.float32)
    # Tile-aligned interior store (column offset PAD_L=8 is a whole f32
    # sublane tile, so no relayout on the store).
    hp_ref[1:h + 1, PAD_L:PAD_L + w, :] = h1.reshape(h, w, h1.shape[-1])

    # Hoist all loop-invariant loads / broadcasts out of the row-block loop.
    wk = wdw_ref[...]                                      # (9, HID)
    w_taps = [wk[t] for t in range(9)]                     # 9 x (HID,)
    b2b = jnp.broadcast_to(b2_ref[...], (hb, w, HID)).astype(jnp.float32)
    w2 = w2_ref[...]                                       # (HID, OUP) bf16
    b3 = b3_ref[...]                                       # (1, OUP)

    # --- 3x3 depthwise + BN + ReLU (VPU, f32), then 1x1 project + BN
    #     (bf16 MXU feed) (+ residual), row-blocked --------------------------
    def block(rb, carry):
        r0 = rb * hb                                       # output row start
        acc = b2b                                          # init with BN2 bias
        for dy in range(3):
            for dx in range(3):
                # Direct VMEM load of the tap patch (no wide live "rows" value).
                patch = hp_ref[pl.ds(r0 + dy, hb),
                               pl.ds(PAD_L - 1 + dx, w), :]  # (hb, w, HID)
                acc = acc + patch * w_taps[dy * 3 + dx]
        hdw = jnp.maximum(acc, 0.0)                        # (hb, w, HID) f32

        y = jnp.dot(hdw.reshape(hb * w, HID).astype(jnp.bfloat16), w2,
                    preferred_element_type=jnp.float32) + b3   # (hb*w, OUP)
        m0 = pl.multiple_of(r0 * w, hb * w)
        if use_res:
            y = y + x_ref[0, pl.ds(m0, hb * w), :].astype(jnp.float32)
        o_ref[0, pl.ds(m0, hb * w), :] = y.astype(o_ref.dtype)
        return carry

    lax.fori_loop(0, h // hb, block, 0, unroll=True)


def fused_inverted_residual(x2d, w1f, b1, wdwf, b2, w2f, b3, *, h, w):
    """x2d: (N, H*W, INP) channels-last. Returns (N, H*W, OUP)."""
    n, hw, _ = x2d.shape
    # Row-block height: largest divisor of h that is <= 8, so the depthwise
    # accumulator never exceeds ~16 vregs (no spill cliff for odd heights).
    hb = next(c for c in (8, 4, 2, 1) if h % c == 0)
    kernel = functools.partial(_fused_kernel, h=h, w=w, hb=hb,
                               expand=(EXPAND_RATIO != 1), use_res=USE_RES)
    return pl.pallas_call(
        kernel,
        out_shape=jax.ShapeDtypeStruct((n, hw, OUP), x2d.dtype),
        grid=(n,),
        in_specs=[
            pl.BlockSpec((1, hw, INP), lambda i: (i, 0, 0)),
            pl.BlockSpec((INP, HID), lambda i: (0, 0)),
            pl.BlockSpec((1, HID), lambda i: (0, 0)),
            pl.BlockSpec((9, HID), lambda i: (0, 0)),
            pl.BlockSpec((1, HID), lambda i: (0, 0)),
            pl.BlockSpec((HID, OUP), lambda i: (0, 0)),
            pl.BlockSpec((1, OUP), lambda i: (0, 0)),
        ],
        out_specs=pl.BlockSpec((1, hw, OUP), lambda i: (i, 0, 0)),
        scratch_shapes=[
            pltpu.VMEM((h + 2, PAD_L + w + PAD_R, HID), jnp.float32)],
        compiler_params=pltpu.CompilerParams(
            dimension_semantics=("parallel",)),
    )(x2d, w1f, b1, wdwf, b2, w2f, b3)


# ----------------------------------------------------------------------------
# InvertedResidual forward (Pallas) and pure-JAX reference
# ----------------------------------------------------------------------------
def inverted_residual_forward(x_nchw, p):
    # TODO(synk): only stride=1 is implemented in the fused kernel (matches this
    # block's config); a stride=2 variant would index the padded scratch at
    # 2*row / 2*col offsets instead of computing stride-1 and subsampling.
    assert STRIDE == 1
    x = jnp.transpose(x_nchw, (0, 2, 3, 1))                # NCHW -> NHWC
    n, h, w, _ = x.shape
    x2d = x.reshape(n, h * w, INP)

    # Fold eval-mode BN scale into the conv weights (trace-time constant fold
    # on parameters); 1x1 conv weights are pre-cast to bf16 (MXU feed dtype).
    s1, b1 = _fold_bn(p["g1"], p["b1"], p["m1"], p["v1"])
    w1f = (p["w1"] * s1[None, :]).astype(jnp.bfloat16)
    s2, b2 = _fold_bn(p["g2"], p["b2"], p["m2"], p["v2"])
    wdwf = (p["wdw"] * s2[None, None, :]).reshape(9, HID)
    s3, b3 = _fold_bn(p["g3"], p["b3"], p["m3"], p["v3"])
    w2f = (p["w2"] * s3[None, :]).astype(jnp.bfloat16)

    out2d = fused_inverted_residual(
        x2d, w1f, b1.reshape(1, HID), wdwf, b2.reshape(1, HID),
        w2f, b3.reshape(1, OUP), h=h, w=w)
    out = out2d.reshape(n, h, w, OUP)
    return jnp.transpose(out, (0, 3, 1, 2))                # NHWC -> NCHW


def reference_forward(x_nchw, p):
    x = jnp.transpose(x_nchw, (0, 2, 3, 1))
    dn = ("NHWC", "HWIO", "NHWC")
    hi = lax.Precision.HIGHEST
    h = x
    if EXPAND_RATIO != 1:
        s1, b1 = _fold_bn(p["g1"], p["b1"], p["m1"], p["v1"])
        h = lax.conv_general_dilated(h, p["w1"].reshape(1, 1, INP, HID),
                                     (1, 1), "VALID", dimension_numbers=dn,
                                     precision=hi)
        h = jnp.maximum(h * s1 + b1, 0.0)
    s2, b2 = _fold_bn(p["g2"], p["b2"], p["m2"], p["v2"])
    h = lax.conv_general_dilated(h, p["wdw"].reshape(3, 3, 1, HID),
                                 (STRIDE, STRIDE), ((1, 1), (1, 1)),
                                 dimension_numbers=dn,
                                 feature_group_count=HID, precision=hi)
    h = jnp.maximum(h * s2 + b2, 0.0)
    s3, b3 = _fold_bn(p["g3"], p["b3"], p["m3"], p["v3"])
    h = lax.conv_general_dilated(h, p["w2"].reshape(1, 1, HID, OUP),
                                 (1, 1), "VALID", dimension_numbers=dn,
                                 precision=hi)
    h = h * s3 + b3
    if USE_RES:
        h = h + x
    return jnp.transpose(h, (0, 3, 1, 2))


def make_params(key):
    ks = jax.random.split(key, 12)

    def bn(kg, kb, c):
        gamma = 1.0 + 0.1 * jax.random.normal(kg, (c,), jnp.float32)
        beta = 0.1 * jax.random.normal(kb, (c,), jnp.float32)
        mean = 0.05 * jnp.arange(c, dtype=jnp.float32) / c
        var = 1.0 + 0.02 * jnp.arange(c, dtype=jnp.float32) / c
        return gamma, beta, mean, var

    p = {}
    # 1x1 expand: PyTorch weight (HID, INP, 1, 1) -> stored as (INP, HID)
    p["w1"] = 0.1 * jax.random.normal(ks[0], (INP, HID), jnp.float32)
    p["g1"], p["b1"], p["m1"], p["v1"] = bn(ks[1], ks[2], HID)
    # 3x3 depthwise: PyTorch weight (HID, 1, 3, 3) -> stored as (3, 3, HID)
    p["wdw"] = 0.1 * jax.random.normal(ks[3], (3, 3, HID), jnp.float32)
    p["g2"], p["b2"], p["m2"], p["v2"] = bn(ks[4], ks[5], HID)
    # 1x1 project: PyTorch weight (OUP, HID, 1, 1) -> stored as (HID, OUP)
    p["w2"] = 0.1 * jax.random.normal(ks[6], (HID, OUP), jnp.float32)
    p["g3"], p["b3"], p["m3"], p["v3"] = bn(ks[7], ks[8], OUP)
    return p


if __name__ == "__main__":
    key = jax.random.PRNGKey(0)
    kx, kp = jax.random.split(key)
    x = jax.random.normal(kx, (N, INP, H, W), jnp.float32)  # NCHW, like PyTorch
    params = make_params(kp)

    fwd = jax.jit(inverted_residual_forward)
    out = jax.block_until_ready(fwd(x, params))

    ref = reference_forward(x, params)
    assert out.shape == (N, OUP, H // STRIDE, W // STRIDE), out.shape
    max_err = float(jnp.max(jnp.abs(out - ref)))
    # Tolerance widened vs. the pure-f32 version: the two 1x1 convs now feed
    # the MXU with bf16 operands (f32 accumulation), per the perf review.
    if not jnp.allclose(out, ref, atol=2e-2, rtol=2e-2):
        raise AssertionError(f"Pallas output mismatch, max abs err = {max_err}")
    print("KERNEL_OK")
</pallas_src>

<mosaic_0001>
module attributes {stable_mosaic.version = 11 : i64} {
  func.func @_fused_kernel(%arg0: i32, %arg1: memref<1x256x32xf32, #tpu.memory_space<vmem>>, %arg2: memref<32x128xbf16, #tpu.memory_space<vmem>>, %arg3: memref<1x128xf32, #tpu.memory_space<vmem>>, %arg4: memref<9x128xf32, #tpu.memory_space<vmem>>, %arg5: memref<1x128xf32, #tpu.memory_space<vmem>>, %arg6: memref<128x32xbf16, #tpu.memory_space<vmem>>, %arg7: memref<1x32xf32, #tpu.memory_space<vmem>>, %arg8: memref<1x256x32xf32, #tpu.memory_space<vmem>>, %arg9: memref<18x32x128xf32, #tpu.memory_space<vmem>>) attributes {dimension_semantics = [#tpu.dimension_semantics<parallel>], iteration_bounds = array<i64: 2>, scalar_prefetch = 0 : i64, scratch_operands = 1 : i64, tpu.core_type = #tpu.core_type<tc>, window_params = [{transform_indices = @transform_0, window_bounds = array<i64: 1, 256, 32>}, {pipeline_mode = #tpu.pipeline_mode<synchronous>, transform_indices = @transform_1, window_bounds = array<i64: 32, 128>}, {pipeline_mode = #tpu.pipeline_mode<synchronous>, transform_indices = @transform_2, window_bounds = array<i64: 1, 128>}, {pipeline_mode = #tpu.pipeline_mode<synchronous>, transform_indices = @transform_3, window_bounds = array<i64: 9, 128>}, {pipeline_mode = #tpu.pipeline_mode<synchronous>, transform_indices = @transform_4, window_bounds = array<i64: 1, 128>}, {pipeline_mode = #tpu.pipeline_mode<synchronous>, transform_indices = @transform_5, window_bounds = array<i64: 128, 32>}, {pipeline_mode = #tpu.pipeline_mode<synchronous>, transform_indices = @transform_6, window_bounds = array<i64: 1, 32>}, {transform_indices = @transform_7, window_bounds = array<i64: 1, 256, 32>}]} {
    %cst = arith.constant 0.000000e+00 : f32
    %0 = vector.broadcast %cst : f32 to vector<1x32x128xf32>
    %c0 = arith.constant 0 : index
    %c0_0 = arith.constant 0 : index
    %c0_1 = arith.constant 0 : index
    %1 = vector.load %arg9[%c0, %c0_0, %c0_1] : memref<18x32x128xf32, #tpu.memory_space<vmem>>, vector<1x32x128xf32>
    tpu.vector_store %arg9[%c0, %c0_0, %c0_1], %0 {strides = array<i32>} : memref<18x32x128xf32, #tpu.memory_space<vmem>>, vector<1x32x128xf32>,
    %cst_2 = arith.constant 0.000000e+00 : f32
    %2 = vector.broadcast %cst_2 : f32 to vector<1x32x128xf32>
    %c17 = arith.constant 17 : index
    %c0_3 = arith.constant 0 : index
    %c0_4 = arith.constant 0 : index
    %3 = vector.load %arg9[%c17, %c0_3, %c0_4] : memref<18x32x128xf32, #tpu.memory_space<vmem>>, vector<1x32x128xf32>
    tpu.vector_store %arg9[%c17, %c0_3, %c0_4], %2 {strides = array<i32>} : memref<18x32x128xf32, #tpu.memory_space<vmem>>, vector<1x32x128xf32>,
    %cst_5 = arith.constant 0.000000e+00 : f32
    %4 = vector.broadcast %cst_5 : f32 to vector<16x8x128xf32>
    %c1 = arith.constant 1 : index
    %c0_6 = arith.constant 0 : index
    %c0_7 = arith.constant 0 : index
    %5 = vector.load %arg9[%c1, %c0_6, %c0_7] : memref<18x32x128xf32, #tpu.memory_space<vmem>>, vector<16x8x128xf32>
    tpu.vector_store %arg9[%c1, %c0_6, %c0_7], %4 {strides = array<i32>} : memref<18x32x128xf32, #tpu.memory_space<vmem>>, vector<16x8x128xf32>,
    %cst_8 = arith.constant 0.000000e+00 : f32
    %6 = vector.broadcast %cst_8 : f32 to vector<16x8x128xf32>
    %c1_9 = arith.constant 1 : index
    %c24 = arith.constant 24 : index
    %c0_10 = arith.constant 0 : index
    %7 = vector.load %arg9[%c1_9, %c24, %c0_10] : memref<18x32x128xf32, #tpu.memory_space<vmem>>, vector<16x8x128xf32>
    tpu.vector_store %arg9[%c1_9, %c24, %c0_10], %6 {strides = array<i32>} : memref<18x32x128xf32, #tpu.memory_space<vmem>>, vector<16x8x128xf32>,
    %c0_11 = arith.constant 0 : index
    %c0_12 = arith.constant 0 : index
    %c0_13 = arith.constant 0 : index
    %8 = vector.load %arg1[%c0_11, %c0_12, %c0_13] : memref<1x256x32xf32, #tpu.memory_space<vmem>>, vector<1x256x32xf32>
    %9 = vector.shape_cast %8 : vector<1x256x32xf32> to vector<256x32xf32>
    %10 = arith.truncf %9 : vector<256x32xf32> to vector<256x32xbf16>
    %c0_14 = arith.constant 0 : index
    %c0_15 = arith.constant 0 : index
    %11 = vector.load %arg2[%c0_14, %c0_15] : memref<32x128xbf16, #tpu.memory_space<vmem>>, vector<32x128xbf16>
    %cst_16 = arith.constant dense<0.000000e+00> : vector<256x128xf32>
    %12 = tpu.matmul %10, %11, %cst_16 {dimension_numbers = #tpu.dot_dimension_numbers<[1], [0], [0], [1], [0, 0, 1, 1], [], []>} : vector<256x32xbf16>, vector<32x128xbf16>, vector<256x128xf32> -> vector<256x128xf32>
    %c0_17 = arith.constant 0 : index
    %c0_18 = arith.constant 0 : index
    %13 = vector.load %arg3[%c0_17, %c0_18] : memref<1x128xf32, #tpu.memory_space<vmem>>, vector<1x128xf32>
    %14 = vector.broadcast %13 : vector<1x128xf32> to vector<256x128xf32>
    %15 = arith.addf %12, %14 : vector<256x128xf32>
    %cst_19 = arith.constant 0.000000e+00 : f32
    %16 = vector.broadcast %cst_19 : f32 to vector<256x128xf32>
    %17 = arith.maximumf %15, %16 : vector<256x128xf32>
    %18 = vector.shape_cast %17 : vector<256x128xf32> to vector<16x16x128xf32>
    %c1_20 = arith.constant 1 : index
    %c8 = arith.constant 8 : index
    %c0_21 = arith.constant 0 : index
    %19 = vector.load %arg9[%c1_20, %c8, %c0_21] : memref<18x32x128xf32, #tpu.memory_space<vmem>>, vector<16x16x128xf32>
    tpu.vector_store %arg9[%c1_20, %c8, %c0_21], %18 {strides = array<i32>} : memref<18x32x128xf32, #tpu.memory_space<vmem>>, vector<16x16x128xf32>,
    %c0_22 = arith.constant 0 : index
    %c0_23 = arith.constant 0 : index
    %20 = vector.load %arg4[%c0_22, %c0_23] : memref<9x128xf32, #tpu.memory_space<vmem>>, vector<9x128xf32>
    %21 = vector.extract_strided_slice %20 {offsets = [0, 0], sizes = [1, 128], strides = [1, 1]} : vector<9x128xf32> to vector<1x128xf32>
    %22 = vector.shape_cast %21 : vector<1x128xf32> to vector<128xf32>
    %23 = vector.extract_strided_slice %20 {offsets = [1, 0], sizes = [1, 128], strides = [1, 1]} : vector<9x128xf32> to vector<1x128xf32>
    %24 = vector.shape_cast %23 : vector<1x128xf32> to vector<128xf32>
    %25 = vector.extract_strided_slice %20 {offsets = [2, 0], sizes = [1, 128], strides = [1, 1]} : vector<9x128xf32> to vector<1x128xf32>
    %26 = vector.shape_cast %25 : vector<1x128xf32> to vector<128xf32>
    %27 = vector.extract_strided_slice %20 {offsets = [3, 0], sizes = [1, 128], strides = [1, 1]} : vector<9x128xf32> to vector<1x128xf32>
    %28 = vector.shape_cast %27 : vector<1x128xf32> to vector<128xf32>
    %29 = vector.extract_strided_slice %20 {offsets = [4, 0], sizes = [1, 128], strides = [1, 1]} : vector<9x128xf32> to vector<1x128xf32>
    %30 = vector.shape_cast %29 : vector<1x128xf32> to vector<128xf32>
    %31 = vector.extract_strided_slice %20 {offsets = [5, 0], sizes = [1, 128], strides = [1, 1]} : vector<9x128xf32> to vector<1x128xf32>
    %32 = vector.shape_cast %31 : vector<1x128xf32> to vector<128xf32>
    %33 = vector.extract_strided_slice %20 {offsets = [6, 0], sizes = [1, 128], strides = [1, 1]} : vector<9x128xf32> to vector<1x128xf32>
    %34 = vector.shape_cast %33 : vector<1x128xf32> to vector<128xf32>
    %35 = vector.extract_strided_slice %20 {offsets = [7, 0], sizes = [1, 128], strides = [1, 1]} : vector<9x128xf32> to vector<1x128xf32>
    %36 = vector.shape_cast %35 : vector<1x128xf32> to vector<128xf32>
    %37 = vector.extract_strided_slice %20 {offsets = [8, 0], sizes = [1, 128], strides = [1, 1]} : vector<9x128xf32> to vector<1x128xf32>
    %38 = vector.shape_cast %37 : vector<1x128xf32> to vector<128xf32>
    %c0_24 = arith.constant 0 : index
    %c0_25 = arith.constant 0 : index
    %39 = vector.load %arg5[%c0_24, %c0_25] : memref<1x128xf32, #tpu.memory_space<vmem>>, vector<1x128xf32>
    %40 = vector.shape_cast %39 : vector<1x128xf32> to vector<1x1x128xf32>
    %41 = vector.broadcast %40 : vector<1x1x128xf32> to vector<8x16x128xf32>
    %c0_26 = arith.constant 0 : index
    %c0_27 = arith.constant 0 : index
    %42 = vector.load %arg6[%c0_26, %c0_27] : memref<128x32xbf16, #tpu.memory_space<vmem>>, vector<128x32xbf16>
    %c0_28 = arith.constant 0 : index
    %c0_29 = arith.constant 0 : index
    %43 = vector.load %arg7[%c0_28, %c0_29] : memref<1x32xf32, #tpu.memory_space<vmem>>, vector<1x32xf32>
    %c0_i32 = arith.constant 0 : i32
    %c8_i32 = arith.constant 8 : i32
    %44 = arith.muli %c0_i32, %c8_i32 : i32
    %c0_i32_30 = arith.constant 0 : i32
    %45 = arith.addi %44, %c0_i32_30 : i32
    %46 = arith.index_cast %45 : i32 to index
    %c7 = arith.constant 7 : index
    %c0_31 = arith.constant 0 : index
    %47 = vector.load %arg9[%46, %c7, %c0_31] : memref<18x32x128xf32, #tpu.memory_space<vmem>>, vector<8x16x128xf32>
    %48 = vector.shape_cast %22 : vector<128xf32> to vector<1x1x128xf32>
    %49 = vector.broadcast %48 : vector<1x1x128xf32> to vector<8x16x128xf32>
    %50 = arith.mulf %47, %49 : vector<8x16x128xf32>
    %51 = arith.addf %41, %50 : vector<8x16x128xf32>
    %c0_i32_32 = arith.constant 0 : i32
    %52 = arith.addi %44, %c0_i32_32 : i32
    %53 = arith.index_cast %52 : i32 to index
    %c8_33 = arith.constant 8 : index
    %c0_34 = arith.constant 0 : index
    %54 = vector.load %arg9[%53, %c8_33, %c0_34] : memref<18x32x128xf32, #tpu.memory_space<vmem>>, vector<8x16x128xf32>
    %55 = vector.shape_cast %24 : vector<128xf32> to vector<1x1x128xf32>
    %56 = vector.broadcast %55 : vector<1x1x128xf32> to vector<8x16x128xf32>
    %57 = arith.mulf %54, %56 : vector<8x16x128xf32>
    %58 = arith.addf %51, %57 : vector<8x16x128xf32>
    %c0_i32_35 = arith.constant 0 : i32
    %59 = arith.addi %44, %c0_i32_35 : i32
    %60 = arith.index_cast %59 : i32 to index
    %c9 = arith.constant 9 : index
    %c0_36 = arith.constant 0 : index
    %61 = vector.load %arg9[%60, %c9, %c0_36] : memref<18x32x128xf32, #tpu.memory_space<vmem>>, vector<8x16x128xf32>
    %62 = vector.shape_cast %26 : vector<128xf32> to vector<1x1x128xf32>
    %63 = vector.broadcast %62 : vector<1x1x128xf32> to vector<8x16x128xf32>
    %64 = arith.mulf %61, %63 : vector<8x16x128xf32>
    %65 = arith.addf %58, %64 : vector<8x16x128xf32>
    %c1_i32 = arith.constant 1 : i32
    %66 = arith.addi %44, %c1_i32 : i32
    %67 = arith.index_cast %66 : i32 to index
    %c7_37 = arith.constant 7 : index
    %c0_38 = arith.constant 0 : index
    %68 = vector.load %arg9[%67, %c7_37, %c0_38] : memref<18x32x128xf32, #tpu.memory_space<vmem>>, vector<8x16x128xf32>
    %69 = vector.shape_cast %28 : vector<128xf32> to vector<1x1x128xf32>
    %70 = vector.broadcast %69 : vector<1x1x128xf32> to vector<8x16x128xf32>
    %71 = arith.mulf %68, %70 : vector<8x16x128xf32>
    %72 = arith.addf %65, %71 : vector<8x16x128xf32>
    %c1_i32_39 = arith.constant 1 : i32
    %73 = arith.addi %44, %c1_i32_39 : i32
    %74 = arith.index_cast %73 : i32 to index
    %c8_40 = arith.constant 8 : index
    %c0_41 = arith.constant 0 : index
    %75 = vector.load %arg9[%74, %c8_40, %c0_41] : memref<18x32x128xf32, #tpu.memory_space<vmem>>, vector<8x16x128xf32>
    %76 = vector.shape_cast %30 : vector<128xf32> to vector<1x1x128xf32>
    %77 = vector.broadcast %76 : vector<1x1x128xf32> to vector<8x16x128xf32>
    %78 = arith.mulf %75, %77 : vector<8x16x128xf32>
    %79 = arith.addf %72, %78 : vector<8x16x128xf32>
    %c1_i32_42 = arith.constant 1 : i32
    %80 = arith.addi %44, %c1_i32_42 : i32
    %81 = arith.index_cast %80 : i32 to index
    %c9_43 = arith.constant 9 : index
    %c0_44 = arith.constant 0 : index
    %82 = vector.load %arg9[%81, %c9_43, %c0_44] : memref<18x32x128xf32, #tpu.memory_space<vmem>>, vector<8x16x128xf32>
    %83 = vector.shape_cast %32 : vector<128xf32> to vector<1x1x128xf32>
    %84 = vector.broadcast %83 : vector<1x1x128xf32> to vector<8x16x128xf32>
    %85 = arith.mulf %82, %84 : vector<8x16x128xf32>
    %86 = arith.addf %79, %85 : vector<8x16x128xf32>
    %c2_i32 = arith.constant 2 : i32
    %87 = arith.addi %44, %c2_i32 : i32
    %88 = arith.index_cast %87 : i32 to index
    %c7_45 = arith.constant 7 : index
    %c0_46 = arith.constant 0 : index
    %89 = vector.load %arg9[%88, %c7_45, %c0_46] : memref<18x32x128xf32, #tpu.memory_space<vmem>>, vector<8x16x128xf32>
    %90 = vector.shape_cast %34 : vector<128xf32> to vector<1x1x128xf32>
    %91 = vector.broadcast %90 : vector<1x1x128xf32> to vector<8x16x128xf32>
    %92 = arith.mulf %89, %91 : vector<8x16x128xf32>
    %93 = arith.addf %86, %92 : vector<8x16x128xf32>
    %c2_i32_47 = arith.constant 2 : i32
    %94 = arith.addi %44, %c2_i32_47 : i32
    %95 = arith.index_cast %94 : i32 to index
    %c8_48 = arith.constant 8 : index
    %c0_49 = arith.constant 0 : index
    %96 = vector.load %arg9[%95, %c8_48, %c0_49] : memref<18x32x128xf32, #tpu.memory_space<vmem>>, vector<8x16x128xf32>
    %97 = vector.shape_cast %36 : vector<128xf32> to vector<1x1x128xf32>
    %98 = vector.broadcast %97 : vector<1x1x128xf32> to vector<8x16x128xf32>
    %99 = arith.mulf %96, %98 : vector<8x16x128xf32>
    %100 = arith.addf %93, %99 : vector<8x16x128xf32>
    %c2_i32_50 = arith.constant 2 : i32
    %101 = arith.addi %44, %c2_i32_50 : i32
    %102 = arith.index_cast %101 : i32 to index
    %c9_51 = arith.constant 9 : index
    %c0_52 = arith.constant 0 : index
    %103 = vector.load %arg9[%102, %c9_51, %c0_52] : memref<18x32x128xf32, #tpu.memory_space<vmem>>, vector<8x16x128xf32>
    %104 = vector.shape_cast %38 : vector<128xf32> to vector<1x1x128xf32>
    %105 = vector.broadcast %104 : vector<1x1x128xf32> to vector<8x16x128xf32>
    %106 = arith.mulf %103, %105 : vector<8x16x128xf32>
    %107 = arith.addf %100, %106 : vector<8x16x128xf32>
    %cst_53 = arith.constant 0.000000e+00 : f32
    %108 = vector.broadcast %cst_53 : f32 to vector<8x16x128xf32>
    %109 = arith.maximumf %107, %108 : vector<8x16x128xf32>
    %110 = vector.shape_cast %109 : vector<8x16x128xf32> to vector<128x128xf32>
    %111 = arith.truncf %110 : vector<128x128xf32> to vector<128x128xbf16>
    %cst_54 = arith.constant dense<0.000000e+00> : vector<128x32xf32>
    %112 = tpu.matmul %111, %42, %cst_54 {dimension_numbers = #tpu.dot_dimension_numbers<[1], [0], [0], [1], [0, 0, 1, 1], [], []>} : vector<128x128xbf16>, vector<128x32xbf16>, vector<128x32xf32> -> vector<128x32xf32>
    %113 = vector.broadcast %43 : vector<1x32xf32> to vector<128x32xf32>
    %114 = arith.addf %112, %113 : vector<128x32xf32>
    %c16_i32 = arith.constant 16 : i32
    %115 = arith.muli %44, %c16_i32 : i32
    %116 = tpu.assume_multiple %115, 128 : i32
    %c0_55 = arith.constant 0 : index
    %117 = arith.index_cast %116 : i32 to index
    %c0_56 = arith.constant 0 : index
    %118 = vector.load %arg1[%c0_55, %117, %c0_56] : memref<1x256x32xf32, #tpu.memory_space<vmem>>, vector<1x128x32xf32>
    %119 = vector.shape_cast %118 : vector<1x128x32xf32> to vector<128x32xf32>
    %120 = arith.addf %114, %119 : vector<128x32xf32>
    %c0_57 = arith.constant 0 : index
    %121 = arith.index_cast %116 : i32 to index
    %c0_58 = arith.constant 0 : index
    %122 = vector.load %arg8[%c0_57, %121, %c0_58] : memref<1x256x32xf32, #tpu.memory_space<vmem>>, vector<1x128x32xf32>
    %123 = vector.shape_cast %122 : vector<1x128x32xf32> to vector<128x32xf32>
    %124 = vector.shape_cast %120 : vector<128x32xf32> to vector<1x128x32xf32>
    tpu.vector_store %arg8[%c0_57, %121, %c0_58], %124 {strides = array<i32>} : memref<1x256x32xf32, #tpu.memory_space<vmem>>, vector<1x128x32xf32>,
    %c1_i32_59 = arith.constant 1 : i32
    %c8_i32_60 = arith.constant 8 : i32
    %125 = arith.muli %c1_i32_59, %c8_i32_60 : i32
    %c0_i32_61 = arith.constant 0 : i32
    %126 = arith.addi %125, %c0_i32_61 : i32
    %127 = arith.index_cast %126 : i32 to index
    %c7_62 = arith.constant 7 : index
    %c0_63 = arith.constant 0 : index
    %128 = vector.load %arg9[%127, %c7_62, %c0_63] : memref<18x32x128xf32, #tpu.memory_space<vmem>>, vector<8x16x128xf32>
    %129 = vector.shape_cast %22 : vector<128xf32> to vector<1x1x128xf32>
    %130 = vector.broadcast %129 : vector<1x1x128xf32> to vector<8x16x128xf32>
    %131 = arith.mulf %128, %130 : vector<8x16x128xf32>
    %132 = arith.addf %41, %131 : vector<8x16x128xf32>
    %c0_i32_64 = arith.constant 0 : i32
    %133 = arith.addi %125, %c0_i32_64 : i32
    %134 = arith.index_cast %133 : i32 to index
    %c8_65 = arith.constant 8 : index
    %c0_66 = arith.constant 0 : index
    %135 = vector.load %arg9[%134, %c8_65, %c0_66] : memref<18x32x128xf32, #tpu.memory_space<vmem>>, vector<8x16x128xf32>
    %136 = vector.shape_cast %24 : vector<128xf32> to vector<1x1x128xf32>
    %137 = vector.broadcast %136 : vector<1x1x128xf32> to vector<8x16x128xf32>
    %138 = arith.mulf %135, %137 : vector<8x16x128xf32>
    %139 = arith.addf %132, %138 : vector<8x16x128xf32>
    %c0_i32_67 = arith.constant 0 : i32
    %140 = arith.addi %125, %c0_i32_67 : i32
    %141 = arith.index_cast %140 : i32 to index
    %c9_68 = arith.constant 9 : index
    %c0_69 = arith.constant 0 : index
    %142 = vector.load %arg9[%141, %c9_68, %c0_69] : memref<18x32x128xf32, #tpu.memory_space<vmem>>, vector<8x16x128xf32>
    %143 = vector.shape_cast %26 : vector<128xf32> to vector<1x1x128xf32>
    %144 = vector.broadcast %143 : vector<1x1x128xf32> to vector<8x16x128xf32>
    %145 = arith.mulf %142, %144 : vector<8x16x128xf32>
    %146 = arith.addf %139, %145 : vector<8x16x128xf32>
    %c1_i32_70 = arith.constant 1 : i32
    %147 = arith.addi %125, %c1_i32_70 : i32
    %148 = arith.index_cast %147 : i32 to index
    %c7_71 = arith.constant 7 : index
    %c0_72 = arith.constant 0 : index
    %149 = vector.load %arg9[%148, %c7_71, %c0_72] : memref<18x32x128xf32, #tpu.memory_space<vmem>>, vector<8x16x128xf32>
    %150 = vector.shape_cast %28 : vector<128xf32> to vector<1x1x128xf32>
    %151 = vector.broadcast %150 : vector<1x1x128xf32> to vector<8x16x128xf32>
    %152 = arith.mulf %149, %151 : vector<8x16x128xf32>
    %153 = arith.addf %146, %152 : vector<8x16x128xf32>
    %c1_i32_73 = arith.constant 1 : i32
    %154 = arith.addi %125, %c1_i32_73 : i32
    %155 = arith.index_cast %154 : i32 to index
    %c8_74 = arith.constant 8 : index
    %c0_75 = arith.constant 0 : index
    %156 = vector.load %arg9[%155, %c8_74, %c0_75] : memref<18x32x128xf32, #tpu.memory_space<vmem>>, vector<8x16x128xf32>
    %157 = vector.shape_cast %30 : vector<128xf32> to vector<1x1x128xf32>
    %158 = vector.broadcast %157 : vector<1x1x128xf32> to vector<8x16x128xf32>
    %159 = arith.mulf %156, %158 : vector<8x16x128xf32>
    %160 = arith.addf %153, %159 : vector<8x16x128xf32>
    %c1_i32_76 = arith.constant 1 : i32
    %161 = arith.addi %125, %c1_i32_76 : i32
    %162 = arith.index_cast %161 : i32 to index
    %c9_77 = arith.constant 9 : index
    %c0_78 = arith.constant 0 : index
    %163 = vector.load %arg9[%162, %c9_77, %c0_78] : memref<18x32x128xf32, #tpu.memory_space<vmem>>, vector<8x16x128xf32>
    %164 = vector.shape_cast %32 : vector<128xf32> to vector<1x1x128xf32>
    %165 = vector.broadcast %164 : vector<1x1x128xf32> to vector<8x16x128xf32>
    %166 = arith.mulf %163, %165 : vector<8x16x128xf32>
    %167 = arith.addf %160, %166 : vector<8x16x128xf32>
    %c2_i32_79 = arith.constant 2 : i32
    %168 = arith.addi %125, %c2_i32_79 : i32
    %169 = arith.index_cast %168 : i32 to index
    %c7_80 = arith.constant 7 : index
    %c0_81 = arith.constant 0 : index
    %170 = vector.load %arg9[%169, %c7_80, %c0_81] : memref<18x32x128xf32, #tpu.memory_space<vmem>>, vector<8x16x128xf32>
    %171 = vector.shape_cast %34 : vector<128xf32> to vector<1x1x128xf32>
    %172 = vector.broadcast %171 : vector<1x1x128xf32> to vector<8x16x128xf32>
    %173 = arith.mulf %170, %172 : vector<8x16x128xf32>
    %174 = arith.addf %167, %173 : vector<8x16x128xf32>
    %c2_i32_82 = arith.constant 2 : i32
    %175 = arith.addi %125, %c2_i32_82 : i32
    %176 = arith.index_cast %175 : i32 to index
    %c8_83 = arith.constant 8 : index
    %c0_84 = arith.constant 0 : index
    %177 = vector.load %arg9[%176, %c8_83, %c0_84] : memref<18x32x128xf32, #tpu.memory_space<vmem>>, vector<8x16x128xf32>
    %178 = vector.shape_cast %36 : vector<128xf32> to vector<1x1x128xf32>
    %179 = vector.broadcast %178 : vector<1x1x128xf32> to vector<8x16x128xf32>
    %180 = arith.mulf %177, %179 : vector<8x16x128xf32>
    %181 = arith.addf %174, %180 : vector<8x16x128xf32>
    %c2_i32_85 = arith.constant 2 : i32
    %182 = arith.addi %125, %c2_i32_85 : i32
    %183 = arith.index_cast %182 : i32 to index
    %c9_86 = arith.constant 9 : index
    %c0_87 = arith.constant 0 : index
    %184 = vector.load %arg9[%183, %c9_86, %c0_87] : memref<18x32x128xf32, #tpu.memory_space<vmem>>, vector<8x16x128xf32>
    %185 = vector.shape_cast %38 : vector<128xf32> to vector<1x1x128xf32>
    %186 = vector.broadcast %185 : vector<1x1x128xf32> to vector<8x16x128xf32>
    %187 = arith.mulf %184, %186 : vector<8x16x128xf32>
    %188 = arith.addf %181, %187 : vector<8x16x128xf32>
    %cst_88 = arith.constant 0.000000e+00 : f32
    %189 = vector.broadcast %cst_88 : f32 to vector<8x16x128xf32>
    %190 = arith.maximumf %188, %189 : vector<8x16x128xf32>
    %191 = vector.shape_cast %190 : vector<8x16x128xf32> to vector<128x128xf32>
    %192 = arith.truncf %191 : vector<128x128xf32> to vector<128x128xbf16>
    %cst_89 = arith.constant dense<0.000000e+00> : vector<128x32xf32>
    %193 = tpu.matmul %192, %42, %cst_89 {dimension_numbers = #tpu.dot_dimension_numbers<[1], [0], [0], [1], [0, 0, 1, 1], [], []>} : vector<128x128xbf16>, vector<128x32xbf16>, vector<128x32xf32> -> vector<128x32xf32>
    %194 = vector.broadcast %43 : vector<1x32xf32> to vector<128x32xf32>
    %195 = arith.addf %193, %194 : vector<128x32xf32>
    %c16_i32_90 = arith.constant 16 : i32
    %196 = arith.muli %125, %c16_i32_90 : i32
    %197 = tpu.assume_multiple %196, 128 : i32
    %c0_91 = arith.constant 0 : index
    %198 = arith.index_cast %197 : i32 to index
    %c0_92 = arith.constant 0 : index
    %199 = vector.load %arg1[%c0_91, %198, %c0_92] : memref<1x256x32xf32, #tpu.memory_space<vmem>>, vector<1x128x32xf32>
    %200 = vector.shape_cast %199 : vector<1x128x32xf32> to vector<128x32xf32>
    %201 = arith.addf %195, %200 : vector<128x32xf32>
    %c0_93 = arith.constant 0 : index
    %202 = arith.index_cast %197 : i32 to index
    %c0_94 = arith.constant 0 : index
    %203 = vector.load %arg8[%c0_93, %202, %c0_94] : memref<1x256x32xf32, #tpu.memory_space<vmem>>, vector<1x128x32xf32>
    %204 = vector.shape_cast %203 : vector<1x128x32xf32> to vector<128x32xf32>
    %205 = vector.shape_cast %201 : vector<128x32xf32> to vector<1x128x32xf32>
    tpu.vector_store %arg8[%c0_93, %202, %c0_94], %205 {strides = array<i32>} : memref<1x256x32xf32, #tpu.memory_space<vmem>>, vector<1x128x32xf32>,
    %c2_i32_95 = arith.constant 2 : i32
    return
  }
  func.func @transform_0(%arg0: i32) -> (i32, i32, i32) {
    %c0_i32 = arith.constant 0 : i32
    %c0_i32_0 = arith.constant 0 : i32
    %c0_i32_1 = arith.constant 0 : i32
    return %arg0, %c0_i32, %c0_i32_0 : i32, i32, i32
  }
  func.func @transform_1(%arg0: i32) -> (i32, i32) {
    %c0_i32 = arith.constant 0 : i32
    %c0_i32_0 = arith.constant 0 : i32
    %c0_i32_1 = arith.constant 0 : i32
    return %c0_i32, %c0_i32_0 : i32, i32
  }
  func.func @transform_2(%arg0: i32) -> (i32, i32) {
    %c0_i32 = arith.constant 0 : i32
    %c0_i32_0 = arith.constant 0 : i32
    %c0_i32_1 = arith.constant 0 : i32
    return %c0_i32, %c0_i32_0 : i32, i32
  }
  func.func @transform_3(%arg0: i32) -> (i32, i32) {
    %c0_i32 = arith.constant 0 : i32
    %c0_i32_0 = arith.constant 0 : i32
    %c0_i32_1 = arith.constant 0 : i32
    return %c0_i32, %c0_i32_0 : i32, i32
  }
  func.func @transform_4(%arg0: i32) -> (i32, i32) {
    %c0_i32 = arith.constant 0 : i32
    %c0_i32_0 = arith.constant 0 : i32
    %c0_i32_1 = arith.constant 0 : i32
    return %c0_i32, %c0_i32_0 : i32, i32
  }
  func.func @transform_5(%arg0: i32) -> (i32, i32) {
    %c0_i32 = arith.constant 0 : i32
    %c0_i32_0 = arith.constant 0 : i32
    %c0_i32_1 = arith.constant 0 : i32
    return %c0_i32, %c0_i32_0 : i32, i32
  }
  func.func @transform_6(%arg0: i32) -> (i32, i32) {
    %c0_i32 = arith.constant 0 : i32
    %c0_i32_0 = arith.constant 0 : i32
    %c0_i32_1 = arith.constant 0 : i32
    return %c0_i32, %c0_i32_0 : i32, i32
  }
  func.func @transform_7(%arg0: i32) -> (i32, i32, i32) {
    %c0_i32 = arith.constant 0 : i32
    %c0_i32_0 = arith.constant 0 : i32
    %c0_i32_1 = arith.constant 0 : i32
    return %arg0, %c0_i32, %c0_i32_0 : i32, i32, i32
  }
}

</mosaic_0001>

<bundles_post_ra>
// kernel: inverted_residual_forward.1
= control target key start
LH: loop header
LB: loop body
LE: loop exit
PB: predicated region body
PF: predicated region fallthrough
CT: control target
= control target key end

     0   :  { %12 = vsyncpa [#allocation4], 0  ;;  %s3696_s0 = inlined_call_operand.hbm [shape: f32[2,256,32], index: 0, kind: input, shape index: {}]   ;;  %s3697_s1 = inlined_call_operand.vmem [shape: bf16[32,128], index: 1, kind: input, shape index: {}]   ;;  %s3698_s2 = inlined_call_operand.vmem [shape: f32[1,128], index: 2, kind: input, shape index: {}]   ;;  %s3699_s3 = inlined_call_operand.vmem [shape: f32[9,128], index: 3, kind: input, shape index: {}]   ;;  %s3700_s4 = inlined_call_operand.vmem [shape: f32[1,128], index: 4, kind: input, shape index: {}]   ;;  %s3701_s5 = inlined_call_operand.vmem [shape: bf16[128,32], index: 5, kind: input, shape index: {}]   ;;  %s3702_s6 = inlined_call_operand.vmem [shape: f32[1,32], index: 6, kind: input, shape index: {}]   ;;  %s3703_s7 = inlined_call_operand.hbm [shape: f32[2,256,32], index: 7, kind: output, shape index: {}]  }
   0x1   :  { %14 = vsyncpa [#allocation4 + $0x1], 0 }
   0x2   :  { %15 = vsyncpa [#allocation5], 0 }
   0x3   :  { %17 = vsyncpa [#allocation5 + $0x1], 0  ;;  %s2545_s24 = smov 0   ;;  %s2547_s25 = smov 0  }
   0x4   :  { %s2549_s26 = smov 0   ;;  %s2551_s27 = smov 0  }
   0x5 LB: > { %s2566_s28 = sadd.s32 4294967295, %s2496_s27   ;;  %s2096_s29 = sadd.s32 4294967294, %s2496_s27   ;;  %s2496_s27 = sphi %s2551_s27, %s3738_s27   ;;  %s2492_s26 = sphi %s2549_s26, %s3737_s26   ;;  %s2488_s25 = sphi %s2547_s25, %s3736_s25   ;;  %s2484_s24 = sphi %s2545_s24, %s3735_s24  }
   0x6   : > { %s2570_s30 = sadd.s32 1, %s2496_s27   ;;  %s30_s8 = sadd.s32 1, %s2492_s26 }
   0x7   : > { %s27_s9 = ssub.s32 %s2496_s27, %s2570_s30  ;;  %p37_p0 = scmp.ne.s32.totalorder %s2492_s26, %s2488_s25 }
   0x8   : > { %p28_p1 = scmp.eq.s32.totalorder %s27_s9, 0  ;;  %p38_p2 = scmp.eq.s32.totalorder %s2496_s27, 0 }
   0x9   : > { %p43_p3 = scmp.ne.s32.totalorder %s2488_s25, %s2484_s24  ;;  %p44_p4 = scmp.eq.s32.totalorder %s2566_s28, 0 }
   0xa   : > { %s2582_s10 = scalar_select %p28_p1, %s2492_s26, %s30_s8  }
   0xb   : > { %p2584_p5 = por %p38_p2, %p37_p0  ;;  %p2588_p6 = por %p44_p4, %p43_p3 }
   0xc   : > { %p193_p7 = scmp.eq.s32.totalorder %s2566_s28, 1  ;;  %p199_p8 = scmp.eq.s32.totalorder %s2096_s29, 1 }
   0xd   : > { %s3717_s12 = scalar_select %p2588_p6, 1, 0 }
   0xe   : > { %p2352_p10 = scmp.lt.s32.totalorder %s2496_s27, 2  ;;  %p2595_p11 = por %p193_p7, %p37_p0 }
   0xf   : > { %p2599_p12 = por %p199_p8, %p43_p3  ;;  %s237_s15 = sand.u32 1, %s2492_s26  }
  0x10   : > { %s3718_s13 = scalar_select %p2595_p11, 1, 0 }
  0x11   : > { %s3719_s14 = scalar_select %p2599_p12, 1, 0 }
  0x12   : > { %s2172_s16 = sshll.u32 %s2496_s27, 12  ;;  %s2099_s17 = sshll.u32 %s237_s15, 8 }
  0x13   : > { %s2608_s20 = scalar_lea.hbm %s3696_s0, %s2172_s16  ;;  %s241_s21 = scalar_lea.vmem [#allocation3], %s2099_s17 }
  0x14   : > { %s248_s22 = sshll.u32 %s241_s21, 4  ;;  %p2612_p13 = pnand %p2352_p10, %p2584_p5  ;;  %s2616_s22 = int_to_ptr.vmem [resolvable:$true] %s248_s22 }
  0x15   : > { %s2618_s29 = scalar_lea.sflag [#allocation4], %s237_s15  ;;  %s2404_s8 = scalar_lea.hbm %s2608_s20, 4096 }
  0x16   : > { %p2405_p0 = scmp.ne.s32.totalorder %s2608_s20, %s2404_s8  ;;  %p2406_p1 = pneg %p2612_p13 }
  0x17   : > { %s2409_s17 = scalar_lea.hbm %s3696_s0, 8192  ;;  %p2410_p4 = scmp.lt.s32.totalorder %s2608_s20, %s3696_s0 }
  0x18   : > { %p2407_p2 = pnand %p2406_p1, %p2405_p0  ;;  %p2411_p5 = scmp.lt.s32.totalorder %s2409_s17, %s2404_s8 }
  0x1a   : > { %p2408_p3 = pneg %p2407_p2  ;;  %p2412_p7 = por %p2411_p5, %p2410_p4 }
  0x1c   : > { %p2413_p8 = pnand %p2412_p7, %p2408_p3 }
  0x1e   : > { %2416 = shalt.err (!%p2413_p8)
}
  0x1f   : > { %s2417_s15 = scalar_lea.vmem %s2616_s22, 4096  ;;  %s2498_s19 = smov [#allocation3]  }
  0x20   : > { %p2418_p10 = scmp.ne.s32.totalorder %s2616_s22, %s2417_s15  ;;  %s2422_s21 = sshll.u32 %s2498_s19, 4  ;;  %s2423_s21 = int_to_ptr.vmem [resolvable:$false] %s2422_s21 }
  0x21   : > { %s2424_s9 = scalar_lea.vmem %s2423_s21, 8192  ;;  %p2425_p2 = scmp.lt.s32.totalorder %s2616_s22, %s2423_s21 }
  0x22   : > { %p2420_p9 = pnand %p2418_p10, %p2406_p1  ;;  %p2426_p12 = scmp.lt.s32.totalorder %s2424_s9, %s2417_s15 }
  0x24   : > { %p2421_p0 = pneg %p2420_p9  ;;  %p2427_p11 = por %p2426_p12, %p2425_p2 }
  0x26   : > { %p2428_p6 = pnand %p2427_p11, %p2421_p0 }
  0x28   : > { %2431 = shalt.err (!%p2428_p6)
}
  0x29   : > { %s2499_s8 = smov 128   ;;  %s2500_s16 = smov 8  }
  0x2a   : > { %2347 = dma.hbm_to_vmem [thread:$0]  (!%p2612_p13), %s2608_s20, 4096, %s2616_s22, %s2618_s29, %s2499_s8, %s2499_s8, %s2500_s16  }
  0x2b   : > { %p2102_p9 = scmp.ge.s32.totalorder %s2496_s27, 1  ;;  %p256_p1 = scmp.lt.s32.totalorder %s2496_s27, 3 }
  0x2d   : > { %p257_p3 = pnand %p2102_p9, %p256_p1 }
  0x2f   : > { %260 = sbr.rel (%p257_p3) target bundleno = 661 (0x295), region = 48 }
  0x34   : > { %s2642_s17 = sand.u32 1, %s2488_s25   ;;  %p3721_p6 = scmp.ne.s32.totalorder %s3717_s12, 0 }
  0x35   : > { %s2103_s11 = sshll.u32 %s2642_s17, 8  ;;  %s263_s18 = scalar_lea.sflag [#allocation4], %s2642_s17 }
  0x36   : > { %s2648_s15 = scalar_lea.vmem [#allocation3], %s2103_s11 }
  0x37   : > { %2475 = dma.done.wait (%p3721_p6), %s263_s18, 4096  }
  0x38   : > { %2477 = vsyncadd (%p3721_p6), %s263_s18, 4294963200  ;;  %v2391_v0 = vld [vmem:[%s3697_s1 + $0x8] sm:$0xff]   ;;  %v2392_v1 = vld [vmem:[%s3697_s1] sm:$0xff]   ;;  %vm411_vm0 = vcmask 261120   ;;  %v2501_v50 = vmov 0.0   ;;  %v727_v59 = vlaneseq  ;;  %s3521_s22 = scalar_lea.vmem [#allocation6], %s2103_s11 }
  0x39   : > { %2224 = vmatprep.subr.bf16.mxu0 %v2391_v0  ;;  %v340_v2 = vld [vmem:[%s2648_s15] sm:$0xff]  ;;  %v341_v3 = vld [vmem:[%s2648_s15 + $0x8] sm:$0xff]  ;;  %v342_v5 = vld [vmem:[%s2648_s15 + $0x10] sm:$0xff]  ;;  %298 = vst [vmem:[#allocation2] sm:$0xff] %v2501_v50  ;;  %s2173_s11 = sshll.u32 %s2566_s28, 12  ;;  %s2023_s23 = sshll.u32 %s3521_s22, 4  ;;  %s3649_s23 = int_to_ptr.vmem [resolvable:$true] %s2023_s23 }
  0x3a   : > { %2225 = vmatpush3.bf16.msra.mxu0 %v2391_v0  ;;  %v372_v4 = vpack.c.bf16 %v341_v3, %v340_v2  ;;  %v343_v6 = vld [vmem:[%s2648_s15 + $0x18] sm:$0xff]  ;;  %v344_v7 = vld [vmem:[%s2648_s15 + $0x20] sm:$0xff]  ;;  %v345_v8 = vld [vmem:[%s2648_s15 + $0x28] sm:$0xff]  ;;  %299 = vst [vmem:[#allocation2 + $0x8] sm:$0xff] %v2501_v50  ;;  %v728_v60 = vshrl.u32 %v727_v59, 7  ;;  %s3647_s19 = scalar_lea.hbm %s3703_s7, %s2173_s11  ;;  %s2010_s28 = scalar_lea.sflag [#allocation5], %s2642_s17 }
  0x3b   : > { %2226 = vmatprep.subr.bf16.mxu0 %v2392_v1  ;;  %v373_v9 = vpack.c.bf16 %v343_v6, %v342_v5  ;;  %v374_v10 = vpack.c.bf16 %v345_v8, %v344_v7  ;;  %v346_v11 = vld [vmem:[%s2648_s15 + $0x30] sm:$0xff]  ;;  %v347_v12 = vld [vmem:[%s2648_s15 + $0x38] sm:$0xff]  ;;  %v348_v13 = vld [vmem:[%s2648_s15 + $0x40] sm:$0xff]  ;;  %300 = vst [vmem:[#allocation2 + $0x10] sm:$0xff] %v2501_v50  ;;  %p3732_p12 = scmp.ne.s32.totalorder %s3718_s13, 0  ;;  %s2502_s21 = smov [#allocation6]  }
  0x3c   : > { %2228 = vmatprep.mubr.msk.bf16.mxu0 %vm411_vm0, %v372_v4  ;;  %v349_v14 = vld [vmem:[%s2648_s15 + $0x48] sm:$0xff]  ;;  %v375_v15 = vpack.c.bf16 %v347_v12, %v346_v11  ;;  %v350_v17 = vld [vmem:[%s2648_s15 + $0x50] sm:$0xff]  ;;  %v351_v18 = vld [vmem:[%s2648_s15 + $0x58] sm:$0xff]  ;;  %301 = vst [vmem:[#allocation2 + $0x18] sm:$0xff] %v2501_v50  ;;  %v729_v61 = vsub.s32 0, %v728_v60  ;;  %v781_v2 = vsub.s32 1, %v728_v60 }
  0x3d   : > { %v376_v16 = vpack.c.bf16 %v349_v14, %v348_v13  ;;  %v352_v19 = vld [vmem:[%s2648_s15 + $0x60] sm:$0xff]  ;;  %v353_v20 = vld [vmem:[%s2648_s15 + $0x68] sm:$0xff]  ;;  %v377_v21 = vpack.c.bf16 %v351_v18, %v350_v17  ;;  %v354_v23 = vld [vmem:[%s2648_s15 + $0x70] sm:$0xff]  ;;  %308 = vst [vmem:[#allocation2 + $0x20] sm:$0xff] %v2501_v50  ;;  %v833_v4 = vsub.s32 2, %v728_v60  ;;  %v1094_v18 = vsub.s32 7, %v728_v60 }
  0x3e   : > { %2227 = vmatpush3.bf16.msra.mxu0 %v2392_v1  ;;  %v378_v22 = vpack.c.bf16 %v353_v20, %v352_v19  ;;  %v355_v24 = vld [vmem:[%s2648_s15 + $0x78] sm:$0xff]  ;;  %v356_v25 = vld [vmem:[%s2648_s15 + $0x80] sm:$0xff]  ;;  %v357_v26 = vld [vmem:[%s2648_s15 + $0x88] sm:$0xff]  ;;  %309 = vst [vmem:[#allocation2 + $0x40] sm:$0xff] %v2501_v50  ;;  %s2436_s9 = sshll.u32 %s2502_s21, 4  ;;  %s2437_s9 = int_to_ptr.vmem [resolvable:$false] %s2436_s9 }
  0x3f   : > { %v379_v27 = vpack.c.bf16 %v355_v24, %v354_v23  ;;  %v380_v28 = vpack.c.bf16 %v357_v26, %v356_v25  ;;  %v358_v29 = vld [vmem:[%s2648_s15 + $0x90] sm:$0xff]  ;;  %v359_v30 = vld [vmem:[%s2648_s15 + $0x98] sm:$0xff]  ;;  %v360_v31 = vld [vmem:[%s2648_s15 + $0xa0] sm:$0xff]  ;;  %324 = vst [vmem:[#allocation2 + $0x38] sm:$0xff] %v2501_v50  ;;  %v885_v23 = vsub.s32 3, %v728_v60  ;;  %v1042_v25 = vsub.s32 6, %v728_v60  ;;  %p2439_p5 = scmp.lt.s32.totalorder %s3649_s23, %s2437_s9 }
  0x40   : > { %v361_v32 = vld [vmem:[%s2648_s15 + $0xa8] sm:$0xff]  ;;  %v381_v33 = vpack.c.bf16 %v359_v30, %v358_v29  ;;  %v362_v35 = vld [vmem:[%s2648_s15 + $0xb0] sm:$0xff]  ;;  %v363_v36 = vld [vmem:[%s2648_s15 + $0xb8] sm:$0xff]  ;;  %325 = vst [vmem:[#allocation2 + $0x58] sm:$0xff] %v2501_v50  ;;  %s2438_s8 = scalar_lea.vmem %s2437_s9, 8192 }
  0x41   : > { %2229 = vmatmul.mubr.msk.bf16.vlgmr.msra.gmra.mxu0 %vm411_vm0, %v373_v9  ;;  %v382_v34 = vpack.c.bf16 %v361_v32, %v360_v31  ;;  %v364_v37 = vld [vmem:[%s2648_s15 + $0xc0] sm:$0xff]  ;;  %v365_v38 = vld [vmem:[%s2648_s15 + $0xc8] sm:$0xff]  ;;  %v383_v39 = vpack.c.bf16 %v363_v36, %v362_v35  ;;  %v366_v41 = vld [vmem:[%s2648_s15 + $0xd0] sm:$0xff]  ;;  %303 = vst [vmem:[#allocation2 + $0x220] sm:$0xff] %v2501_v50 }
  0x42   : > { %2232 = vmatprep.mubr.msk.bf16.mxu0 %vm411_vm0, %v374_v10  ;;  %v384_v40 = vpack.c.bf16 %v365_v38, %v364_v37  ;;  %v367_v42 = vld [vmem:[%s2648_s15 + $0xd8] sm:$0xff]  ;;  %v368_v43 = vld [vmem:[%s2648_s15 + $0xe0] sm:$0xff]  ;;  %v369_v44 = vld [vmem:[%s2648_s15 + $0xe8] sm:$0xff]  ;;  %304 = vst [vmem:[#allocation2 + $0x228] sm:$0xff] %v2501_v50  ;;  %v937_v10 = vsub.s32 4, %v728_v60 }
  0x43   : > { %v385_v45 = vpack.c.bf16 %v367_v42, %v366_v41  ;;  %v386_v46 = vpack.c.bf16 %v369_v44, %v368_v43  ;;  %v370_v47 = vld [vmem:[%s2648_s15 + $0xf0] sm:$0xff]  ;;  %v371_v48 = vld [vmem:[%s2648_s15 + $0xf8] sm:$0xff]  ;;  %305 = vst [vmem:[#allocation2 + $0x230] sm:$0xff] %v2501_v50  ;;  %306 = vst [vmem:[#allocation2 + $0x238] sm:$0xff] %v2501_v50 }
  0x44   : > { %v387_v49 = vpack.c.bf16 %v371_v48, %v370_v47  ;;  %310 = vst [vmem:[#allocation2 + $0x60] sm:$0xff] %v2501_v50  ;;  %311 = vst [vmem:[#allocation2 + $0x80] sm:$0xff] %v2501_v50  ;;  %v2711_v51 = vld [vmem:[%s3701_s5 + $0x38] sm:$0xff]   ;;  %v2720_v52 = vld [vmem:[%s3701_s5 + $0x30] sm:$0xff]  }
  0x45   : > { %312 = vst [vmem:[#allocation2 + $0xa0] sm:$0xff] %v2501_v50  ;;  %313 = vst [vmem:[#allocation2 + $0xc0] sm:$0xff] %v2501_v50  ;;  %2260 = vmatprep.subr.bf16.mxu1 %v2711_v51  ;;  %2292 = vmatprep.subr.bf16.mxu0 %v2711_v51  ;;  %v2729_v53 = vld [vmem:[%s3701_s5 + $0x28] sm:$0xff]   ;;  %v2738_v54 = vld [vmem:[%s3701_s5 + $0x20] sm:$0xff]  }
  0x46   : > { %314 = vst [vmem:[#allocation2 + $0xe0] sm:$0xff] %v2501_v50  ;;  %315 = vst [vmem:[#allocation2 + $0x100] sm:$0xff] %v2501_v50  ;;  %2261 = vmatpush3.bf16.msra.mxu1 %v2711_v51  ;;  %2293 = vmatpush3.bf16.msra.mxu0 %v2711_v51  ;;  %v2747_v55 = vld [vmem:[%s3701_s5 + $0x18] sm:$0xff]   ;;  %v2756_v56 = vld [vmem:[%s3701_s5 + $0x10] sm:$0xff]  }
  0x47   : > { %316 = vst [vmem:[#allocation2 + $0x120] sm:$0xff] %v2501_v50  ;;  %317 = vst [vmem:[#allocation2 + $0x140] sm:$0xff] %v2501_v50  ;;  %2262 = vmatprep.subr.bf16.mxu1 %v2720_v52  ;;  %2294 = vmatprep.subr.bf16.mxu0 %v2720_v52  ;;  %v2765_v57 = vld [vmem:[%s3701_s5 + $0x8] sm:$0xff]   ;;  %v2774_v58 = vld [vmem:[%s3701_s5] sm:$0xff]  }
  0x48   : > { %318 = vst [vmem:[#allocation2 + $0x160] sm:$0xff] %v2501_v50  ;;  %319 = vst [vmem:[#allocation2 + $0x180] sm:$0xff] %v2501_v50  ;;  %v685_v62 = vld [vmem:[%s3699_s3] sm:$0xff]  ;;  %v712_v1 = vld [vmem:[#allocation2 + $0xf] sm:$0xff] }
  0x49   : > { %2233 = vmatmul.mubr.msk.bf16.gmra.mxu0 %vm411_vm0, %v375_v15  ;;  %320 = vst [vmem:[#allocation2 + $0x1a0] sm:$0xff] %v2501_v50  ;;  %321 = vst [vmem:[#allocation2 + $0x1c0] sm:$0xff] %v2501_v50  ;;  %v2784_v63 = vrot.slane %v685_v62, %v729_v61  ;;  %v711_v0 = vld [vmem:[#allocation2 + $0x7] sm:$0xff]  ;;  %v2790_v5 = vld [vmem:[%s3698_s2] ss:$0 sm:$0xff]  ;;  %v2798_v8 = vrot.slane %v685_v62, %v781_v2  ;;  %v2803_v14 = vrot.slane %v685_v62, %v833_v4 }
  0x4a   : > { %2236 = vmatprep.mubr.msk.bf16.mxu0 %vm411_vm0, %v376_v16  ;;  %322 = vst [vmem:[#allocation2 + $0x1e0] sm:$0xff] %v2501_v50  ;;  %323 = vst [vmem:[#allocation2 + $0x200] sm:$0xff] %v2501_v50  ;;  %2263 = vmatpush3.bf16.msra.mxu1 %v2720_v52  ;;  %v2795_v6 = vld [vmem:[%s3700_s4] ss:$0 sm:$0xff]  ;;  %v815_v17 = vld [vmem:[#allocation2 + $0x9] sm:$0xff]  ;;  %v2807_v24 = vrot.slane %v685_v62, %v937_v10  ;;  %v2815_v38 = vrot.slane %v685_v62, %v885_v23 }
  0x4b   : > { %326 = vst [vmem:[#allocation2 + $0x78] sm:$0xff] %v2501_v50  ;;  %327 = vst [vmem:[#allocation2 + $0x98] sm:$0xff] %v2501_v50  ;;  %2295 = vmatpush3.bf16.msra.mxu0 %v2720_v52  ;;  %2264 = vmatprep.subr.bf16.mxu1 %v2729_v53  ;;  %v731_v3 = vmul.f32 %v2784_v63, %v711_v0  ;;  %v732_v7 = vmul.f32 %v2784_v63, %v712_v1  ;;  %v783_v13 = vmul.f32 0.0, %v2798_v8 }
  0x4c   : > { %328 = vst [vmem:[#allocation2 + $0xb8] sm:$0xff] %v2501_v50  ;;  %329 = vst [vmem:[#allocation2 + $0xd8] sm:$0xff] %v2501_v50  ;;  %2296 = vmatprep.subr.bf16.mxu0 %v2729_v53  ;;  %v835_v29 = vmul.f32 %v2803_v14, %v815_v17  ;;  %v2818_v42 = vrot.slane %v685_v62, %v1042_v25 }
  0x4d   : > { %330 = vst [vmem:[#allocation2 + $0xf8] sm:$0xff] %v2501_v50  ;;  %331 = vst [vmem:[#allocation2 + $0x118] sm:$0xff] %v2501_v50  ;;  %v747_v12 = vadd.f32 %v2795_v6, %v731_v3  ;;  %v748_v16 = vadd.f32 %v2795_v6, %v732_v7 }
  0x4e   : > { %332 = vst [vmem:[#allocation2 + $0x138] sm:$0xff] %v2501_v50  ;;  %333 = vst [vmem:[#allocation2 + $0x158] sm:$0xff] %v2501_v50  ;;  %2265 = vmatpush3.bf16.msra.mxu1 %v2729_v53 }
  0x4f   : > { %334 = vst [vmem:[#allocation2 + $0x178] sm:$0xff] %v2501_v50  ;;  %335 = vst [vmem:[#allocation2 + $0x198] sm:$0xff] %v2501_v50  ;;  %2297 = vmatpush3.bf16.msra.mxu0 %v2729_v53  ;;  %2266 = vmatprep.subr.bf16.mxu1 %v2738_v54  ;;  %v800_v31 = vadd.f32 %v783_v13, %v748_v16 }
  0x50   : > { %336 = vst [vmem:[#allocation2 + $0x1b8] sm:$0xff] %v2501_v50  ;;  %337 = vst [vmem:[#allocation2 + $0x1d8] sm:$0xff] %v2501_v50  ;;  %2298 = vmatprep.subr.bf16.mxu0 %v2738_v54 }
  0x51   : > { %2237 = vmatmul.mubr.msk.bf16.gmra.mxu0 %vm411_vm0, %v377_v21  ;;  %338 = vst [vmem:[#allocation2 + $0x1f8] sm:$0xff] %v2501_v50  ;;  %339 = vst [vmem:[#allocation2 + $0x218] sm:$0xff] %v2501_v50  ;;  %v816_v21 = vld [vmem:[#allocation2 + $0x11] sm:$0xff] }
  0x52   : > { %2240 = vmatprep.mubr.msk.bf16.mxu0 %vm411_vm0, %v378_v22  ;;  %2267 = vmatpush3.bf16.msra.mxu1 %v2738_v54  ;;  %3722 = vst [vmem:[#allocation9_spill] sm:$0xff] %v2747_v55  ;;  %3723 = vst [vmem:[#allocation10_spill] sm:$0xff] %v2756_v56  ;;  %v836_v32 = vmul.f32 %v2803_v14, %v816_v21 }
  0x53   : > { %2299 = vmatpush3.bf16.msra.mxu0 %v2738_v54  ;;  %2268 = vmatprep.subr.bf16.mxu1 %v2747_v55  ;;  %3724 = vst [vmem:[#allocation11_spill] sm:$0xff] %v2765_v57  ;;  %3725 = vst [vmem:[#allocation12_spill] sm:$0xff] %v2774_v58 }
  0x54   : > { %2300 = vmatprep.subr.bf16.mxu0 %v2747_v55  ;;  %v2820_v44 = vadd.f32 %v836_v32, %v800_v31 }
  0x56   : > { %2269 = vmatpush3.bf16.msra.mxu1 %v2747_v55 }
  0x57   : > { %2301 = vmatpush3.bf16.msra.mxu0 %v2747_v55  ;;  %2270 = vmatprep.subr.bf16.mxu1 %v2756_v56 }
  0x58   : > { %2302 = vmatprep.subr.bf16.mxu0 %v2756_v56 }
  0x59   : > { %2241 = vmatmul.mubr.msk.bf16.gmra.mxu0 %vm411_vm0, %v379_v27 }
  0x5a   : > { %2244 = vmatprep.mubr.msk.bf16.mxu0 %vm411_vm0, %v380_v28  ;;  %2271 = vmatpush3.bf16.msra.mxu1 %v2756_v56  ;;  %v799_v28 = vadd.f32 %v783_v13, %v747_v12 }
  0x5b   : > { %2303 = vmatpush3.bf16.msra.mxu0 %v2756_v56  ;;  %2272 = vmatprep.subr.bf16.mxu1 %v2765_v57 }
  0x5c   : > { %2304 = vmatprep.subr.bf16.mxu0 %v2765_v57  ;;  %v851_v41 = vadd.f32 %v835_v29, %v799_v28 }
  0x5e   : > { %2273 = vmatpush3.bf16.msra.mxu1 %v2765_v57 }
  0x5f   : > { %2305 = vmatpush3.bf16.msra.mxu0 %v2765_v57  ;;  %2274 = vmatprep.subr.bf16.mxu1 %v2774_v58 }
  0x60   : > { %2306 = vmatprep.subr.bf16.mxu0 %v2774_v58 }
  0x61   : > { %2245 = vmatmul.mubr.msk.bf16.gmra.mxu0 %vm411_vm0, %v381_v33  ;;  %v989_v33 = vsub.s32 5, %v728_v60 }
  0x62   : > { %2248 = vmatprep.mubr.msk.bf16.mxu0 %vm411_vm0, %v382_v34  ;;  %2275 = vmatpush3.bf16.msra.mxu1 %v2774_v58  ;;  %v2812_v34 = vrot.slane %v685_v62, %v1094_v18 }
  0x63   : > { %2307 = vmatpush3.bf16.msra.mxu0 %v2774_v58  ;;  %2324 = vmatprep.subr.bf16.mxu1 %v2711_v51 }
  0x69   : > { %2249 = vmatmul.mubr.msk.bf16.gmra.mxu0 %vm411_vm0, %v383_v39 }
  0x6a   : > { %2252 = vmatprep.mubr.msk.bf16.mxu0 %vm411_vm0, %v384_v40 }
  0x71   : > { %2253 = vmatmul.mubr.msk.bf16.gmra.mxu0 %vm411_vm0, %v385_v45  ;;  %v2822_v45 = vrot.slane %v685_v62, %v989_v33 }
  0x72   : > { %2256 = vmatprep.mubr.msk.bf16.mxu0 %vm411_vm0, %v386_v46 }
  0x79   : > { %2257 = vmatmul.mubr.msk.bf16.gmra.mxu0 %vm411_vm0, %v387_v49 }
 0x101   : > { %v2230_v9 = vpop.f32.mrf.mxu0 }
 0x102   : > { %v503_v11 = vadd.f32 %v2230_v9, %v2790_v5 }
 0x103   : > { %v494_v15 = vpop.f32.mrf.mxu0 }
 0x104   : > { %v623_v19 = vmax.f32 %v503_v11, 0.0  ;;  %v495_v20 = vadd.f32 %v2790_v5, %v494_v15 }
 0x105   : > { %v2231_v22 = vpop.f32.mrf.mxu0 }
 0x106   : > { %655 = vst [vmem:[#allocation2 + $0x48] sm:$0xff] %v623_v19  ;;  %v621_v26 = vmax.f32 %v495_v20, 0.0  ;;  %v506_v27 = vadd.f32 %v2231_v22, %v2790_v5  ;;  %v2825_v46 = vmul.f32 %v2812_v34, %v623_v19  ;;  %v2828_v47 = vmul.f32 %v2807_v24, %v623_v19 }
 0x107   : > { %v497_v30 = vpop.f32.mrf.mxu0  ;;  %v2835_v59 = vmul.f32 %v2798_v8, %v623_v19  ;;  %v2869_v19 = vld [vmem:[%s3699_s3 + $0x8] ss:$0 sm:$0xff] }
 0x108   : > { %653 = vst [vmem:[#allocation2 + $0x28] sm:$0xff] %v621_v26  ;;  %v624_v35 = vmax.f32 %v506_v27, 0.0  ;;  %v498_v36 = vadd.f32 %v2790_v5, %v497_v30  ;;  %v939_v50 = vmul.f32 %v2807_v24, %v621_v26  ;;  %v785_v0 = vmul.f32 %v2798_v8, %v621_v26 }
 0x109   : > { %v2234_v37 = vpop.f32.mrf.mxu0 }
 0x10a   : > { %656 = vst [vmem:[#allocation2 + $0x50] sm:$0xff] %v624_v35  ;;  %v622_v39 = vmax.f32 %v498_v36, 0.0  ;;  %v519_v40 = vadd.f32 %v2234_v37, %v2790_v5  ;;  %v2838_v62 = vmul.f32 %v2812_v34, %v624_v35  ;;  %v2842_v1 = vmul.f32 %v2807_v24, %v624_v35 }
 0x10b   : > { %v510_v43 = vpop.f32.mrf.mxu0  ;;  %v2845_v2 = vmul.f32 %v2798_v8, %v624_v35 }
 0x10c   : > { %654 = vst [vmem:[#allocation2 + $0x30] sm:$0xff] %v622_v39  ;;  %v2830_v48 = vmax.f32 %v519_v40, 0.0  ;;  %v511_v49 = vadd.f32 %v2790_v5, %v510_v43  ;;  %v940_v7 = vmul.f32 %v2807_v24, %v622_v39  ;;  %v786_v9 = vmul.f32 %v2798_v8, %v622_v39 }
 0x10d   : > { %v2235_v60 = vpop.f32.mrf.mxu0  ;;  %v1024_v61 = vld [vmem:[#allocation2 + $0x47] sm:$0xff] }
 0x10e   : > { %659 = vst [vmem:[#allocation2 + $0x88] sm:$0xff] %v2830_v48  ;;  %v2848_v3 = vmax.f32 %v511_v49, 0.0  ;;  %v522_v4 = vadd.f32 %v2235_v60, %v2790_v5  ;;  %v1044_v12 = vmul.f32 %v2818_v42, %v1024_v61  ;;  %v2855_v13 = vmul.f32 %v1024_v61, %v2815_v38 }
 0x10f   : > { %v513_v10 = vpop.f32.mrf.mxu0  ;;  %v867_v11 = vld [vmem:[#allocation2 + $0x27] sm:$0xff]  ;;  %v735_v15 = vmul.f32 %v1024_v61, %v2784_v63  ;;  %v2860_v16 = vmul.f32 %v2812_v34, %v2830_v48  ;;  %v2890_v30 = vmul.f32 %v2807_v24, %v2830_v48 }
 0x110   : > { %657 = vst [vmem:[#allocation2 + $0x68] sm:$0xff] %v2848_v3  ;;  %v2863_v17 = vmax.f32 %v522_v4, 0.0  ;;  %v514_v18 = vadd.f32 %v2790_v5, %v513_v10  ;;  %v887_v20 = vmul.f32 %v2815_v38, %v867_v11  ;;  %v733_v21 = vmul.f32 %v867_v11, %v2784_v63 }
 0x111   : > { %v2238_v22 = vpop.f32.mrf.mxu0  ;;  %v1025_v23 = vld [vmem:[#allocation2 + $0x4f] sm:$0xff]  ;;  %v2879_v27 = vmul.f32 %v2812_v34, %v2848_v3  ;;  %v2882_v28 = vadd.f32 %v2795_v6, %v735_v15  ;;  %v2886_v29 = vmul.f32 %v2807_v24, %v2848_v3 }
 0x112   : > { %v2873_v25 = vld [vmem:[#allocation2 + $0x49] sm:$0xff]  ;;  %v2875_v26 = vld [vmem:[#allocation2 + $0x51] sm:$0xff]  ;;  %660 = vst [vmem:[#allocation2 + $0x90] sm:$0xff] %v2863_v17  ;;  %v2893_v31 = vmax.f32 %v514_v18, 0.0  ;;  %v535_v32 = vadd.f32 %v2238_v22, %v2790_v5  ;;  %v903_v33 = vadd.f32 %v887_v20, %v851_v41  ;;  %v1045_v35 = vmul.f32 %v2818_v42, %v1025_v23 }
 0x113   : > { %v526_v36 = vpop.f32.mrf.mxu0  ;;  %v868_v37 = vld [vmem:[#allocation2 + $0x2f] sm:$0xff]  ;;  %v1148_v43 = vmul.f32 %v2869_v19, %v2873_v25  ;;  %v2901_v49 = vmul.f32 %v2869_v19, %v2875_v26  ;;  %v749_v60 = vadd.f32 %v2795_v6, %v733_v21  ;;  %v890_v61 = vmul.f32 %v1025_v23, %v2815_v38 }
 0x114   : > { %v971_v39 = vld [vmem:[#allocation2 + $0x29] sm:$0xff]  ;;  %v972_v40 = vld [vmem:[#allocation2 + $0x31] sm:$0xff]  ;;  %658 = vst [vmem:[#allocation2 + $0x70] sm:$0xff] %v2893_v31  ;;  %v2906_v41 = vmax.f32 %v535_v32, 0.0  ;;  %v527_v4 = vadd.f32 %v2790_v5, %v526_v36  ;;  %v888_v10 = vmul.f32 %v2815_v38, %v868_v37  ;;  %v955_v11 = vadd.f32 %v939_v50, %v903_v33 }
 0x115   : > { %v2239_v15 = vpop.f32.mrf.mxu0  ;;  %v991_v18 = vmul.f32 %v2822_v45, %v971_v39  ;;  %v992_v20 = vmul.f32 %v2822_v45, %v972_v40  ;;  %v734_v22 = vmul.f32 %v868_v37, %v2784_v63  ;;  %v801_v58 = vadd.f32 %v785_v0, %v749_v60 }
 0x116   : > { %3726 = vst [vmem:[#allocation13_spill] sm:$0xff] %v2906_v41  ;;  %663 = vst [vmem:[#allocation2 + $0xc8] sm:$0xff] %v2906_v41  ;;  %v2914_v21 = vmax.f32 %v527_v4, 0.0  ;;  %v538_v32 = vadd.f32 %v2239_v15, %v2790_v5  ;;  %v904_v57 = vadd.f32 %v888_v10, %v2820_v44  ;;  %v837_v36 = vmul.f32 %v971_v39, %v2803_v14 }
 0x117   : > { %v529_v56 = vpop.f32.mrf.mxu0  ;;  %v1007_v50 = vadd.f32 %v991_v18, %v955_v11  ;;  %v750_v33 = vadd.f32 %v2795_v6, %v734_v22  ;;  %v838_v55 = vmul.f32 %v972_v40, %v2803_v14  ;;  %v993_v37 = vmul.f32 %v2873_v25, %v2822_v45  ;;  %v2923_v0 = vld [vmem:[#allocation2 + $0x67] sm:$0xff] }
 0x118   : > { %661 = vst [vmem:[#allocation2 + $0xa8] sm:$0xff] %v2914_v21  ;;  %v2926_v60 = vmax.f32 %v538_v32, 0.0  ;;  %v530_v4 = vadd.f32 %v2790_v5, %v529_v56  ;;  %v956_v44 = vadd.f32 %v940_v7, %v904_v57  ;;  %v853_v10 = vadd.f32 %v837_v36, %v801_v58 }
 0x119   : > { %v2242_v39 = vpop.f32.mrf.mxu0  ;;  %v1060_v15 = vadd.f32 %v1044_v12, %v1007_v50  ;;  %v802_v11 = vadd.f32 %v786_v9, %v750_v33  ;;  %v994_v18 = vmul.f32 %v2875_v26, %v2822_v45  ;;  %v1046_v40 = vmul.f32 %v2818_v42, %v2923_v0 }
 0x11a   : > { %664 = vst [vmem:[#allocation2 + $0xd0] sm:$0xff] %v2926_v60  ;;  %v2934_v22 = vmax.f32 %v530_v4, 0.0  ;;  %v551_v32 = vadd.f32 %v2242_v39, %v2790_v5  ;;  %v1008_v41 = vadd.f32 %v992_v20, %v956_v44  ;;  %v905_v56 = vadd.f32 %v2855_v13, %v853_v10 }
 0x11b   : > { %v542_v57 = vpop.f32.mrf.mxu0  ;;  %v1112_v58 = vadd.f32 %v2825_v46, %v1060_v15  ;;  %v854_v7 = vadd.f32 %v838_v55, %v802_v11  ;;  %v2939_v9 = vld [vmem:[#allocation2 + $0x6f] sm:$0xff]  ;;  %v1099_v12 = vmul.f32 %v2812_v34, %v2893_v31  ;;  %v736_v50 = vmul.f32 %v1025_v23, %v2784_v63 }
 0x11c   : > { %v2943_v36 = vld [vmem:[#allocation2 + $0x69] sm:$0xff]  ;;  %662 = vst [vmem:[#allocation2 + $0xb0] sm:$0xff] %v2934_v22  ;;  %v635_v33 = vmax.f32 %v551_v32, 0.0  ;;  %v2948_v20 = vadd.f32 %v2790_v5, %v542_v57  ;;  %v1061_v13 = vadd.f32 %v1045_v35, %v1008_v41  ;;  %v957_v4 = vadd.f32 %v2828_v47, %v905_v56  ;;  %v2951_v46 = vld [vmem:[#allocation2 + $0x71] sm:$0xff] }
 0x11d   : > { %v2243_v55 = vpop.f32.mrf.mxu0  ;;  %v1164_v44 = vadd.f32 %v1148_v43, %v1112_v58  ;;  %v906_v10 = vadd.f32 %v890_v61, %v854_v7  ;;  %v1047_v39 = vmul.f32 %v2818_v42, %v2939_v9  ;;  %v1150_v23 = vmul.f32 %v2869_v19, %v2943_v36 }
 0x11e   : > { %667 = vst [vmem:[#allocation2 + $0x108] sm:$0xff] %v635_v33  ;;  %v633_v15 = vmax.f32 %v2948_v20, 0.0  ;;  %v554_v11 = vadd.f32 %v2243_v55, %v2790_v5  ;;  %v1113_v35 = vadd.f32 %v2838_v62, %v1061_v13  ;;  %v1009_v41 = vadd.f32 %v993_v37, %v957_v4 }
 0x11f   : > { %v545_v47 = vpop.f32.mrf.mxu0  ;;  %v1180_v32 = vmax.f32 %v1164_v44, 0.0  ;;  %v958_v56 = vadd.f32 %v2842_v1, %v906_v10  ;;  %v1151_v43 = vmul.f32 %v2869_v19, %v2951_v46  ;;  %v752_v61 = vadd.f32 %v2795_v6, %v736_v50 }
 0x120   : > { %665 = vst [vmem:[#allocation2 + $0xe8] sm:$0xff] %v633_v15  ;;  %v636_v57 = vmax.f32 %v554_v11, 0.0  ;;  %v2967_v58 = vadd.f32 %v2790_v5, %v545_v47  ;;  %v1165_v7 = vadd.f32 %v2901_v49, %v1113_v35  ;;  %v1062_v62 = vadd.f32 %v1046_v40, %v1009_v41 }
 0x121   : > { %v2246_v37 = vpop.f32.mrf.mxu0  ;;  %v1010_v33 = vadd.f32 %v994_v18, %v958_v56  ;;  %v803_v1 = vadd.f32 %v2835_v59, %v2882_v28  ;;  %v804_v13 = vadd.f32 %v2845_v2, %v752_v61  ;;  %v839_v50 = vmul.f32 %v2873_v25, %v2803_v14 }
 0x122   : > { %668 = vst [vmem:[#allocation2 + $0x110] sm:$0xff] %v636_v57  ;;  %v634_v4 = vmax.f32 %v2967_v58, 0.0  ;;  %v567_v55 = vadd.f32 %v2246_v37, %v2790_v5  ;;  %v1181_v44 = vmax.f32 %v1165_v7, 0.0  ;;  %v1114_v10 = vadd.f32 %v2879_v27, %v1062_v62  ;;  %v2990_v7 = vld [vmem:[#allocation2 + $0x87] sm:$0xff] }
 0x123   : > { %v558_v49 = vpop.f32.mrf.mxu0  ;;  %v1063_v40 = vadd.f32 %v1047_v39, %v1010_v33  ;;  %v840_v18 = vmul.f32 %v2875_v26, %v2803_v14  ;;  %v855_v11 = vadd.f32 %v839_v50, %v803_v1  ;;  %v891_v59 = vmul.f32 %v2923_v0, %v2815_v38  ;;  %v2997_v1 = vld [vmem:[#allocation2 + $0x8f] sm:$0xff] }
 0x124   : > { %666 = vst [vmem:[#allocation2 + $0xf0] sm:$0xff] %v634_v4  ;;  %v639_v2 = vmax.f32 %v567_v55, 0.0  ;;  %v559_v25 = vadd.f32 %v2790_v5, %v558_v49  ;;  %v1196_v28 = vpack.c.bf16 %v1181_v44, %v1180_v32  ;;  %v1166_v35 = vadd.f32 %v1150_v23, %v1114_v10  ;;  %v3002_v10 = vld [vmem:[#allocation2 + $0x89] sm:$0xff] }
 0x125   : > { %v2247_v41 = vpop.f32.mrf.mxu0  ;;  %v1115_v47 = vadd.f32 %v1099_v12, %v1063_v40  ;;  %v856_v27 = vadd.f32 %v840_v18, %v804_v13  ;;  %v892_v39 = vmul.f32 %v2939_v9, %v2815_v38  ;;  %v907_v56 = vadd.f32 %v891_v59, %v855_v11 }
 0x126   : > { %671 = vst [vmem:[#allocation2 + $0x148] sm:$0xff] %v639_v2  ;;  %v637_v26 = vmax.f32 %v559_v25, 0.0  ;;  %v570_v61 = vadd.f32 %v2247_v41, %v2790_v5  ;;  %2276 = vmatprep.mubr.bf16.mxu1 %v1196_v28  ;;  %v944_v57 = vmul.f32 %v2807_v24, %v2893_v31  ;;  %v789_v23 = vmul.f32 %v2798_v8, %v2848_v3 }
 0x127   : > { %v561_v32 = vpop.f32.mrf.mxu0  ;;  %v1167_v12 = vadd.f32 %v1151_v43, %v1115_v47  ;;  %v908_v62 = vadd.f32 %v892_v39, %v856_v27  ;;  %v959_v37 = vadd.f32 %v2886_v29, %v907_v56  ;;  %v995_v33 = vmul.f32 %v2943_v36, %v2822_v45  ;;  %v3017_v56 = vld [vmem:[#allocation2 + $0x91] sm:$0xff] }
 0x128   : > { %669 = vst [vmem:[#allocation2 + $0x128] sm:$0xff] %v637_v26  ;;  %v640_v13 = vmax.f32 %v570_v61, 0.0  ;;  %v562_v50 = vadd.f32 %v2790_v5, %v561_v32  ;;  %v1182_v55 = vmax.f32 %v1166_v35, 0.0  ;;  %v996_v44 = vmul.f32 %v2951_v46, %v2822_v45 }
 0x129   : > { %v2250_v3 = vpop.f32.mrf.mxu0  ;;  %v1183_v43 = vmax.f32 %v1167_v12, 0.0  ;;  %v960_v49 = vadd.f32 %v944_v57, %v908_v62  ;;  %v1011_v40 = vadd.f32 %v995_v33, %v959_v37  ;;  %v1048_v29 = vmul.f32 %v2818_v42, %v2990_v7 }
 0x12a   : > { %672 = vst [vmem:[#allocation2 + $0x150] sm:$0xff] %v640_v13  ;;  %v3006_v18 = vmax.f32 %v562_v50, 0.0  ;;  %v583_v11 = vadd.f32 %v2250_v3, %v2790_v5  ;;  %v1049_v59 = vmul.f32 %v2818_v42, %v2997_v1  ;;  %v1101_v2 = vmul.f32 %v2812_v34, %v2863_v17 }
 0x12b   : > { %v574_v25 = vpop.f32.mrf.mxu0  ;;  %v1197_v28 = vpack.c.bf16 %v1183_v43, %v1182_v55  ;;  %v1012_v35 = vadd.f32 %v996_v44, %v960_v49  ;;  %v1064_v41 = vadd.f32 %v1048_v29, %v1011_v40  ;;  %v1152_v47 = vmul.f32 %v2869_v19, %v3002_v10 }
 0x12c   : > { %670 = vst [vmem:[#allocation2 + $0x130] sm:$0xff] %v3006_v18  ;;  %v643_v27 = vmax.f32 %v583_v11, 0.0  ;;  %v575_v39 = vadd.f32 %v2790_v5, %v574_v25  ;;  %v737_v26 = vmul.f32 %v2923_v0, %v2784_v63  ;;  %v738_v61 = vmul.f32 %v2939_v9, %v2784_v63 }
 0x12d   : > { %2277 = vmatmul.mubr.bf16.vlgmr.msra.gmra.mxu1 %v1197_v28  ;;  %v2251_v57 = vpop.f32.mrf.mxu0  ;;  %v1065_v32 = vadd.f32 %v1049_v59, %v1012_v35  ;;  %v1116_v12 = vadd.f32 %v2860_v16, %v1064_v41  ;;  %v790_v62 = vmul.f32 %v2798_v8, %v2893_v31  ;;  %v841_v37 = vmul.f32 %v2943_v36, %v2803_v14  ;;  %v3049_v35 = vld [vmem:[#allocation2 + $0xaf] sm:$0xff] }
 0x12e   : > { %675 = vst [vmem:[#allocation2 + $0x188] sm:$0xff] %v643_v27  ;;  %v641_v33 = vmax.f32 %v575_v39, 0.0  ;;  %v586_v13 = vadd.f32 %v2251_v57, %v2790_v5  ;;  %v753_v0 = vadd.f32 %v2795_v6, %v737_v26  ;;  %v754_v50 = vadd.f32 %v2795_v6, %v738_v61  ;;  %2332 = vmatpush3.bf16.msra.mxu1 %v2711_v51 }
 0x12f   : > { %v1117_v9 = vadd.f32 %v1101_v2, %v1065_v32  ;;  %v1153_v16 = vmul.f32 %v2869_v19, %v3017_v56  ;;  %v1168_v55 = vadd.f32 %v1152_v47, %v1116_v12  ;;  %v577_v44 = vpop.f32.mrf.mxu0  ;;  %v842_v31 = vmul.f32 %v2951_v46, %v2803_v14  ;;  %2325 = vmatprep.subr.bf16.mxu1 %v2720_v52 }
 0x130   : > { %673 = vst [vmem:[#allocation2 + $0x168] sm:$0xff] %v641_v33  ;;  %v644_v36 = vmax.f32 %v586_v13, 0.0  ;;  %v578_v3 = vadd.f32 %v2790_v5, %v577_v44  ;;  %v805_v43 = vadd.f32 %v789_v23, %v753_v0  ;;  %v806_v49 = vadd.f32 %v790_v62, %v754_v50  ;;  %v3047_v23 = vld [vmem:[#allocation2 + $0xa7] sm:$0xff]  ;;  %v3073_v44 = vld [vmem:[#allocation2 + $0xb1] sm:$0xff] }
 0x131   : > { %v1169_v40 = vadd.f32 %v1153_v16, %v1117_v9  ;;  %v2254_v29 = vpop.f32.mrf.mxu0  ;;  %v893_v51 = vmul.f32 %v2990_v7, %v2815_v38  ;;  %v894_v11 = vmul.f32 %v2997_v1, %v2815_v38  ;;  %v791_v59 = vmul.f32 %v2798_v8, %v2830_v48  ;;  %v3065_v33 = vld [vmem:[#allocation2 + $0xa9] sm:$0xff] }
 0x132   : > { %676 = vst [vmem:[#allocation2 + $0x190] sm:$0xff] %v644_v36  ;;  %v3044_v46 = vmax.f32 %v578_v3, 0.0  ;;  %v599_v2 = vadd.f32 %v2254_v29, %v2790_v5  ;;  %v857_v25 = vadd.f32 %v841_v37, %v805_v43  ;;  %v858_v28 = vadd.f32 %v842_v31, %v806_v49  ;;  %2333 = vmatpush3.bf16.msra.mxu1 %v2720_v52 }
 0x133   : > { %v1184_v41 = vmax.f32 %v1168_v55, 0.0  ;;  %v1185_v47 = vmax.f32 %v1169_v40, 0.0  ;;  %v590_v27 = vpop.f32.mrf.mxu0  ;;  %v946_v39 = vmul.f32 %v2807_v24, %v2863_v17  ;;  %v997_v48 = vmul.f32 %v3002_v10, %v2822_v45  ;;  %2326 = vmatprep.subr.bf16.mxu1 %v2729_v53 }
 0x134   : > { %674 = vst [vmem:[#allocation2 + $0x170] sm:$0xff] %v3044_v46  ;;  %v647_v26 = vmax.f32 %v599_v2, 0.0  ;;  %v591_v61 = vadd.f32 %v2790_v5, %v590_v27  ;;  %v909_v57 = vadd.f32 %v893_v51, %v857_v25  ;;  %v910_v32 = vadd.f32 %v894_v11, %v858_v28 }
 0x135   : > { %v1198_v12 = vpack.c.bf16 %v1185_v47, %v1184_v41  ;;  %v998_v52 = vmul.f32 %v3017_v56, %v2822_v45  ;;  %v1050_v62 = vmul.f32 %v2818_v42, %v3047_v23  ;;  %v1051_v37 = vmul.f32 %v2818_v42, %v3049_v35  ;;  %v2255_v13 = vpop.f32.mrf.mxu0 }
 0x136   : > { %679 = vst [vmem:[#allocation2 + $0x1c8] sm:$0xff] %v647_v26  ;;  %v645_v0 = vmax.f32 %v591_v61, 0.0  ;;  %v961_v50 = vadd.f32 %v2890_v30, %v909_v57  ;;  %v962_v9 = vadd.f32 %v946_v39, %v910_v32  ;;  %v1102_v16 = vmul.f32 %v2812_v34, %v2914_v21  ;;  %2334 = vmatpush3.bf16.msra.mxu1 %v2729_v53  ;;  %v3098_v39 = vld [vmem:[#allocation2 + $0xc7] sm:$0xff] }
 0x137   : > { %2280 = vmatprep.mubr.bf16.mxu1 %v1198_v12  ;;  %v1103_v55 = vmul.f32 %v2812_v34, %v2934_v22  ;;  %v602_v31 = vadd.f32 %v2255_v13, %v2790_v5  ;;  %v739_v36 = vmul.f32 %v2990_v7, %v2784_v63  ;;  %v740_v30 = vmul.f32 %v2997_v1, %v2784_v63  ;;  %v593_v3 = vpop.f32.mrf.mxu0  ;;  %v3727_v26 = vld [vmem:[#allocation9_spill] sm:$0xff] }
 0x138   : > { %677 = vst [vmem:[#allocation2 + $0x1a8] sm:$0xff] %v645_v0  ;;  %v1013_v43 = vadd.f32 %v997_v48, %v961_v50  ;;  %v1014_v49 = vadd.f32 %v998_v52, %v962_v9  ;;  %v1154_v53 = vmul.f32 %v2869_v19, %v3065_v33  ;;  %v792_v40 = vmul.f32 %v2798_v8, %v2863_v17  ;;  %v3100_v48 = vld [vmem:[#allocation2 + $0xcf] sm:$0xff] }
 0x139   : > { %2327 = vmatprep.subr.bf16.mxu1 %v2738_v54  ;;  %v648_v29 = vmax.f32 %v602_v31, 0.0  ;;  %v755_v51 = vadd.f32 %v2795_v6, %v739_v36  ;;  %v756_v7 = vadd.f32 %v2795_v6, %v740_v30  ;;  %v843_v1 = vmul.f32 %v3002_v10, %v2803_v14  ;;  %v2258_v41 = vpop.f32.mrf.mxu0  ;;  %v3729_v30 = vld [vmem:[#allocation10_spill] sm:$0xff] }
 0x13a   : > { %v1066_v11 = vadd.f32 %v1050_v62, %v1013_v43  ;;  %v1067_v2 = vadd.f32 %v1051_v37, %v1014_v49  ;;  %v1155_v25 = vmul.f32 %v2869_v19, %v3073_v44  ;;  %v844_v28 = vmul.f32 %v3017_v56, %v2803_v14  ;;  %2335 = vmatpush3.bf16.msra.mxu1 %v2738_v54 }
 0x13b   : > { %680 = vst [vmem:[#allocation2 + $0x1d0] sm:$0xff] %v648_v29  ;;  %v807_v17 = vadd.f32 %v791_v59, %v755_v51  ;;  %v808_v47 = vadd.f32 %v792_v40, %v756_v7  ;;  %v895_v27 = vmul.f32 %v3047_v23, %v2815_v38  ;;  %v896_v10 = vmul.f32 %v3049_v35, %v2815_v38  ;;  %v606_v50 = vpop.f32.mrf.mxu0 }
 0x13c   : > { %2328 = vmatprep.subr.bf16.mxu1 %v3727_v26  ;;  %v1118_v61 = vadd.f32 %v1102_v16, %v1066_v11  ;;  %v1119_v56 = vadd.f32 %v1103_v55, %v1067_v2  ;;  %v947_v54 = vmul.f32 %v2807_v24, %v2914_v21  ;;  %v948_v59 = vmul.f32 %v2807_v24, %v2934_v22  ;;  %v3728_v55 = vld [vmem:[#allocation13_spill] sm:$0xff]  ;;  %v3126_v2 = vld [vmem:[#allocation2 + $0xc9] sm:$0xff] }
 0x13d   : > { %v859_v57 = vadd.f32 %v843_v1, %v807_v17  ;;  %v860_v32 = vadd.f32 %v844_v28, %v808_v47  ;;  %v999_v12 = vmul.f32 %v3065_v33, %v2822_v45  ;;  %v1000_v52 = vmul.f32 %v3073_v44, %v2822_v45 }
 0x13e   : > { %v1170_v62 = vadd.f32 %v1154_v53, %v1118_v61  ;;  %v1171_v37 = vadd.f32 %v1155_v25, %v1119_v56  ;;  %v1052_v13 = vmul.f32 %v2818_v42, %v3098_v39  ;;  %v1053_v0 = vmul.f32 %v2818_v42, %v3100_v48  ;;  %2336 = vmatpush3.bf16.msra.mxu1 %v3727_v26  ;;  %v3128_v25 = vld [vmem:[#allocation2 + $0xd1] sm:$0xff] }
 0x13f   : > { %v911_v9 = vadd.f32 %v895_v27, %v859_v57  ;;  %v912_v16 = vadd.f32 %v896_v10, %v860_v32  ;;  %v1104_v31 = vmul.f32 %v2812_v34, %v3728_v55  ;;  %v1105_v36 = vmul.f32 %v2812_v34, %v2926_v60  ;;  %2329 = vmatprep.subr.bf16.mxu1 %v3729_v30  ;;  %v3730_v26 = vld [vmem:[#allocation11_spill] sm:$0xff] }
 0x140   : > { %v1186_v43 = vmax.f32 %v1170_v62, 0.0  ;;  %v1187_v49 = vmax.f32 %v1171_v37, 0.0  ;;  %v594_v53 = vadd.f32 %v2790_v5, %v593_v3  ;;  %v615_v40 = vadd.f32 %v2258_v41, %v2790_v5  ;;  %v3153_v62 = vld [vmem:[#allocation2 + $0xe7] sm:$0xff] }
 0x141   : > { %v963_v29 = vadd.f32 %v947_v54, %v911_v9  ;;  %v964_v51 = vadd.f32 %v948_v59, %v912_v16  ;;  %v607_v7 = vadd.f32 %v2790_v5, %v606_v50  ;;  %v741_v1 = vmul.f32 %v3047_v23, %v2784_v63  ;;  %v3160_v50 = vld [vmem:[#allocation2 + $0xef] sm:$0xff]  ;;  %v3731_v9 = vld [vmem:[#allocation12_spill] sm:$0xff] }
 0x142   : > { %v1199_v11 = vpack.c.bf16 %v1187_v49, %v1186_v43  ;;  %v3130_v28 = vmax.f32 %v594_v53, 0.0  ;;  %v651_v17 = vmax.f32 %v615_v40, 0.0  ;;  %v742_v3 = vmul.f32 %v3049_v35, %v2784_v63  ;;  %2337 = vmatpush3.bf16.msra.mxu1 %v3729_v30 }
 0x143   : > { %v1015_v41 = vadd.f32 %v999_v12, %v963_v29  ;;  %v1016_v47 = vadd.f32 %v1000_v52, %v964_v51  ;;  %v649_v27 = vmax.f32 %v607_v7, 0.0  ;;  %v757_v10 = vadd.f32 %v2795_v6, %v741_v1  ;;  %2330 = vmatprep.subr.bf16.mxu1 %v3730_v26  ;;  %v775_v7 = vld [vmem:[#allocation2 + $0xc8] sm:$0xff]  ;;  %v776_v1 = vld [vmem:[#allocation2 + $0xd0] sm:$0xff] }
 0x144   : > { %2281 = vmatmul.mubr.bf16.gmra.mxu1 %v1199_v11  ;;  %678 = vst [vmem:[#allocation2 + $0x1b0] sm:$0xff] %v3130_v28  ;;  %683 = vst [vmem:[#allocation2 + $0x208] sm:$0xff] %v651_v17  ;;  %v758_v23 = vadd.f32 %v2795_v6, %v742_v3  ;;  %v793_v61 = vmul.f32 %v2798_v8, %v2914_v21  ;;  %v794_v35 = vmul.f32 %v2798_v8, %v2934_v22 }
 0x145   : > { %v845_v56 = vmul.f32 %v3065_v33, %v2803_v14  ;;  %v1068_v54 = vadd.f32 %v1052_v13, %v1015_v41  ;;  %v1069_v59 = vadd.f32 %v1053_v0, %v1016_v47  ;;  %v1156_v57 = vmul.f32 %v2869_v19, %v3126_v2  ;;  %681 = vst [vmem:[#allocation2 + $0x1e8] sm:$0xff] %v649_v27 }
 0x146   : > { %v1157_v32 = vmul.f32 %v2869_v19, %v3128_v25  ;;  %v809_v12 = vadd.f32 %v793_v61, %v757_v10  ;;  %v810_v52 = vadd.f32 %v794_v35, %v758_v23  ;;  %v846_v21 = vmul.f32 %v3073_v44, %v2803_v14  ;;  %2338 = vmatpush3.bf16.msra.mxu1 %v3730_v26 }
 0x147   : > { %v897_v22 = vmul.f32 %v3098_v39, %v2815_v38  ;;  %v1120_v33 = vadd.f32 %v1104_v31, %v1068_v54  ;;  %v1121_v37 = vadd.f32 %v1105_v36, %v1069_v59  ;;  %v898_v13 = vmul.f32 %v3100_v48, %v2815_v38  ;;  %2331 = vmatprep.subr.bf16.mxu1 %v3731_v9  ;;  %v2259_v31 = vpop.f32.mrf.mxu0 }
 0x148   : > { %v949_v0 = vmul.f32 %v2807_v24, %v3728_v55  ;;  %v861_v44 = vadd.f32 %v845_v56, %v809_v12  ;;  %v862_v16 = vadd.f32 %v846_v21, %v810_v52  ;;  %v950_v30 = vmul.f32 %v2807_v24, %v2926_v60  ;;  %v1138_v56 = vld [vmem:[#allocation2 + $0xe9] sm:$0xff] }
 0x149   : > { %v1001_v43 = vmul.f32 %v3126_v2, %v2822_v45  ;;  %v1172_v36 = vadd.f32 %v1156_v57, %v1120_v33  ;;  %v1173_v49 = vadd.f32 %v1157_v32, %v1121_v37  ;;  %v1002_v53 = vmul.f32 %v3128_v25, %v2822_v45  ;;  %v931_v57 = vld [vmem:[#allocation2 + $0xe8] sm:$0xff]  ;;  %v932_v37 = vld [vmem:[#allocation2 + $0xf0] sm:$0xff] }
 0x14a   : > { %v1054_v55 = vmul.f32 %v2818_v42, %v3153_v62  ;;  %v913_v40 = vadd.f32 %v897_v22, %v861_v44  ;;  %v914_v29 = vadd.f32 %v898_v13, %v862_v16  ;;  %v1055_v51 = vmul.f32 %v2818_v42, %v3160_v50  ;;  %2339 = vmatpush3.bf16.msra.mxu1 %v3731_v9  ;;  %v3199_v13 = vld [vmem:[#allocation2 + $0x107] sm:$0xff] }
 0x14b   : > { %v1106_v60 = vmul.f32 %v2812_v34, %v633_v15  ;;  %v1188_v11 = vmax.f32 %v1172_v36, 0.0  ;;  %v1189_v17 = vmax.f32 %v1173_v49, 0.0  ;;  %v1107_v3 = vmul.f32 %v2812_v34, %v634_v4  ;;  %v3187_v4 = vld [vmem:[#allocation2 + $0xf1] sm:$0xff]  ;;  %v609_v36 = vpop.f32.mrf.mxu0 }
 0x14c   : > { %v618_v41 = vadd.f32 %v2259_v31, %v2790_v5  ;;  %v965_v47 = vadd.f32 %v949_v0, %v913_v40  ;;  %v966_v27 = vadd.f32 %v950_v30, %v914_v29  ;;  %v743_v10 = vmul.f32 %v3098_v39, %v2784_v63  ;;  %v3207_v31 = vld [vmem:[#allocation2 + $0x108] sm:$0xff] }
 0x14d   : > { %v744_v20 = vmul.f32 %v3100_v48, %v2784_v63  ;;  %v1200_v15 = vpack.c.bf16 %v1189_v17, %v1188_v11  ;;  %v795_v23 = vmul.f32 %v2798_v8, %v775_v7  ;;  %v796_v61 = vmul.f32 %v2798_v8, %v776_v1  ;;  %v1089_v11 = vld [vmem:[#allocation2 + $0x110] sm:$0xff] }
 0x14e   : > { %v652_v26 = vmax.f32 %v618_v41, 0.0  ;;  %v1017_v35 = vadd.f32 %v1001_v43, %v965_v47  ;;  %v1018_v58 = vadd.f32 %v1002_v53, %v966_v27  ;;  %v759_v54 = vadd.f32 %v2795_v6, %v743_v10  ;;  %v3205_v43 = vld [vmem:[#allocation2 + $0x10f] sm:$0xff] }
 0x14f   : > { %v760_v59 = vadd.f32 %v2795_v6, %v744_v20  ;;  %2284 = vmatprep.mubr.bf16.mxu1 %v1200_v15  ;;  %v847_v39 = vmul.f32 %v3126_v2, %v2803_v14  ;;  %v848_v48 = vmul.f32 %v3128_v25, %v2803_v14  ;;  %v899_v32 = vmul.f32 %v3153_v62, %v2815_v38  ;;  %v1140_v15 = vld [vmem:[#allocation2 + $0x109] sm:$0xff] }
 0x150   : > { %684 = vst [vmem:[#allocation2 + $0x210] sm:$0xff] %v652_v26  ;;  %v900_v12 = vmul.f32 %v3160_v50, %v2815_v38  ;;  %v1070_v52 = vadd.f32 %v1054_v55, %v1017_v35  ;;  %v1071_v21 = vadd.f32 %v1055_v51, %v1018_v58  ;;  %v811_v22 = vadd.f32 %v795_v23, %v759_v54  ;;  %v1141_v26 = vld [vmem:[#allocation2 + $0x111] sm:$0xff] }
 0x151   : > { %v812_v33 = vadd.f32 %v796_v61, %v760_v59  ;;  %v1158_v0 = vmul.f32 %v2869_v19, %v1138_v56  ;;  %v1159_v2 = vmul.f32 %v2869_v19, %v3187_v4  ;;  %v951_v25 = vmul.f32 %v2807_v24, %v931_v57 }
 0x152   : > { %v1122_v9 = vadd.f32 %v1106_v60, %v1070_v52  ;;  %v1123_v44 = vadd.f32 %v1107_v3, %v1071_v21  ;;  %v863_v16 = vadd.f32 %v847_v39, %v811_v22  ;;  %v952_v49 = vmul.f32 %v2807_v24, %v932_v37 }
 0x153   : > { %v864_v30 = vadd.f32 %v848_v48, %v812_v33  ;;  %v1003_v53 = vmul.f32 %v1138_v56, %v2822_v45  ;;  %v1004_v55 = vmul.f32 %v3187_v4, %v2822_v45  ;;  %v1056_v40 = vmul.f32 %v2818_v42, %v3199_v13 }
 0x154   : > { %v1174_v29 = vadd.f32 %v1158_v0, %v1122_v9  ;;  %v1175_v51 = vadd.f32 %v1159_v2, %v1123_v44  ;;  %v915_v60 = vadd.f32 %v899_v32, %v863_v16  ;;  %v1057_v1 = vmul.f32 %v2818_v42, %v3205_v43  ;;  %v3245_v16 = vld [vmem:[#allocation2 + $0x12f] sm:$0xff] }
 0x155   : > { %v916_v7 = vadd.f32 %v900_v12, %v864_v30  ;;  %v1108_v17 = vmul.f32 %v2812_v34, %v3207_v31  ;;  %v610_v3 = vadd.f32 %v2790_v5, %v609_v36  ;;  %v745_v41 = vmul.f32 %v3153_v62, %v2784_v63  ;;  %v3247_v30 = vld [vmem:[#allocation2 + $0x128] sm:$0xff] }
 0x156   : > { %v1190_v47 = vmax.f32 %v1174_v29, 0.0  ;;  %v1191_v27 = vmax.f32 %v1175_v51, 0.0  ;;  %v967_v10 = vadd.f32 %v951_v25, %v915_v60  ;;  %v746_v61 = vmul.f32 %v3160_v50, %v2784_v63  ;;  %v3239_v25 = vld [vmem:[#allocation2 + $0x127] sm:$0xff] }
 0x157   : > { %v968_v20 = vadd.f32 %v952_v49, %v916_v7  ;;  %v3222_v23 = vmax.f32 %v610_v3, 0.0  ;;  %v761_v35 = vadd.f32 %v2795_v6, %v745_v41  ;;  %v797_v58 = vmul.f32 %v931_v57, %v2798_v8 }
 0x158   : > { %v1201_v54 = vpack.c.bf16 %v1191_v27, %v1190_v47  ;;  %v1019_v5 = vadd.f32 %v1003_v53, %v967_v10  ;;  %v1109_v62 = vmul.f32 %v2812_v34, %v1089_v11  ;;  %v762_v39 = vadd.f32 %v2795_v6, %v746_v61 }
 0x159   : > { %v1020_v59 = vadd.f32 %v1004_v55, %v968_v20  ;;  %682 = vst [vmem:[#allocation2 + $0x1f0] sm:$0xff] %v3222_v23  ;;  %v798_v48 = vmul.f32 %v932_v37, %v2798_v8  ;;  %v813_v32 = vadd.f32 %v797_v58, %v761_v35  ;;  %v849_v12 = vmul.f32 %v1138_v56, %v2803_v14 }
 0x15a   : > { %2285 = vmatmul.mubr.bf16.gmra.mxu1 %v1201_v54  ;;  %v1072_v50 = vadd.f32 %v1056_v40, %v1019_v5  ;;  %v1160_v21 = vmul.f32 %v2869_v19, %v1140_v15  ;;  %v1161_v57 = vmul.f32 %v2869_v19, %v1141_v26  ;;  %v850_v33 = vmul.f32 %v3187_v4, %v2803_v14  ;;  %v1142_v54 = vld [vmem:[#allocation2 + $0x129] sm:$0xff]  ;;  %v1143_v5 = vld [vmem:[#allocation2 + $0x131] sm:$0xff] }
 0x15b   : > { %v1073_v52 = vadd.f32 %v1057_v1, %v1020_v59  ;;  %v814_v22 = vadd.f32 %v798_v48, %v762_v39  ;;  %v865_v0 = vadd.f32 %v849_v12, %v813_v32  ;;  %v901_v2 = vmul.f32 %v3199_v13, %v2815_v38 }
 0x15c   : > { %v1124_v37 = vadd.f32 %v1108_v17, %v1072_v50  ;;  %v902_v56 = vmul.f32 %v3205_v43, %v2815_v38  ;;  %v953_v44 = vmul.f32 %v3207_v31, %v2807_v24  ;;  %v954_v49 = vmul.f32 %v1089_v11, %v2807_v24 }
 0x15d   : > { %v1125_v9 = vadd.f32 %v1109_v62, %v1073_v52  ;;  %v866_v36 = vadd.f32 %v850_v33, %v814_v22  ;;  %v917_v4 = vadd.f32 %v901_v2, %v865_v0  ;;  %v1005_v53 = vmul.f32 %v1140_v15, %v2822_v45  ;;  %v3279_v22 = vld [vmem:[#allocation2 + $0x14f] sm:$0xff] }
 0x15e   : > { %v1176_v55 = vadd.f32 %v1160_v21, %v1124_v37  ;;  %v1006_v29 = vmul.f32 %v1141_v26, %v2822_v45  ;;  %v1058_v51 = vmul.f32 %v2818_v42, %v3239_v25  ;;  %v1059_v1 = vmul.f32 %v2818_v42, %v3245_v16  ;;  %v3285_v37 = vld [vmem:[#allocation2 + $0x148] sm:$0xff] }
 0x15f   : > { %v1177_v40 = vadd.f32 %v1161_v57, %v1125_v9  ;;  %v918_v60 = vadd.f32 %v902_v56, %v866_v36  ;;  %v969_v7 = vadd.f32 %v953_v44, %v917_v4  ;;  %v1110_v17 = vmul.f32 %v2812_v34, %v3247_v30  ;;  %v3277_v57 = vld [vmem:[#allocation2 + $0x147] sm:$0xff]  ;;  %v3287_v9 = vld [vmem:[#allocation2 + $0x150] sm:$0xff] }
 0x160   : > { %v1192_v3 = vmax.f32 %v1176_v55, 0.0  ;;  %v1420_v47 = vmul.f32 %v3199_v13, %v2784_v63  ;;  %v1421_v27 = vmul.f32 %v3205_v43, %v2784_v63  ;;  %v1468_v61 = vmul.f32 %v3207_v31, %v2798_v8 }
 0x161   : > { %v1193_v41 = vmax.f32 %v1177_v40, 0.0  ;;  %v970_v10 = vadd.f32 %v954_v49, %v918_v60  ;;  %v1021_v20 = vadd.f32 %v1005_v53, %v969_v7  ;;  %v1469_v35 = vmul.f32 %v1089_v11, %v2798_v8  ;;  %v1455_v7 = vld [vmem:[#allocation2 + $0x130] sm:$0xff] }
 0x162   : > { %v1436_v59 = vadd.f32 %v2795_v6, %v1420_v47  ;;  %v1437_v62 = vadd.f32 %v2795_v6, %v1421_v27  ;;  %v1516_v39 = vmul.f32 %v1140_v15, %v2803_v14  ;;  %v1111_v43 = vmul.f32 %v2812_v34, %v3006_v18  ;;  %v1791_v47 = vld [vmem:[#allocation2 + $0x151] sm:$0xff] }
 0x163   : > { %v1202_v58 = vpack.c.bf16 %v1193_v41, %v1192_v3  ;;  %v1022_v13 = vadd.f32 %v1006_v29, %v970_v10  ;;  %v1074_v48 = vadd.f32 %v1058_v51, %v1021_v20  ;;  %v1517_v32 = vmul.f32 %v1141_v26, %v2803_v14  ;;  %v1790_v41 = vld [vmem:[#allocation2 + $0x149] sm:$0xff]  ;;  %v3306_v20 = vld [vmem:[%s3700_s4] ss:$0 sm:$0xff] }
 0x164   : > { %v1484_v31 = vadd.f32 %v1468_v61, %v1436_v59  ;;  %v1485_v12 = vadd.f32 %v1469_v35, %v1437_v62  ;;  %v1565_v11 = vmul.f32 %v3239_v25, %v2815_v38  ;;  %v1566_v50 = vmul.f32 %v3245_v16, %v2815_v38 }
 0x165   : > { %2288 = vmatprep.mubr.bf16.mxu1 %v1202_v58  ;;  %v1075_v52 = vadd.f32 %v1059_v1, %v1022_v13  ;;  %v1126_v6 = vadd.f32 %v1110_v17, %v1074_v48  ;;  %v1162_v15 = vmul.f32 %v2869_v19, %v1142_v54  ;;  %v1163_v21 = vmul.f32 %v2869_v19, %v1143_v5 }
 0x166   : > { %v1532_v26 = vadd.f32 %v1516_v39, %v1484_v31  ;;  %v1533_v33 = vadd.f32 %v1517_v32, %v1485_v12  ;;  %v1613_v0 = vmul.f32 %v3247_v30, %v2807_v24  ;;  %v1614_v2 = vmul.f32 %v2807_v24, %v3006_v18 }
 0x167   : > { %v1127_v56 = vadd.f32 %v1111_v43, %v1075_v52  ;;  %v1178_v44 = vadd.f32 %v1162_v15, %v1126_v6  ;;  %v1661_v36 = vmul.f32 %v1142_v54, %v2822_v45  ;;  %v1662_v4 = vmul.f32 %v1143_v5, %v2822_v45 }
 0x168   : > { %v1581_v49 = vadd.f32 %v1565_v11, %v1532_v26  ;;  %v1582_v53 = vadd.f32 %v1566_v50, %v1533_v33  ;;  %v1710_v55 = vmul.f32 %v3277_v57, %v2818_v42  ;;  %v1711_v40 = vmul.f32 %v3279_v22, %v2818_v42  ;;  %v3329_v33 = vld [vmem:[#allocation2 + $0x168] sm:$0xff] }
 0x169   : > { %v1179_v29 = vadd.f32 %v1163_v21, %v1127_v56  ;;  %v1758_v18 = vmul.f32 %v3285_v37, %v2812_v34  ;;  %v1759_v51 = vmul.f32 %v3287_v9, %v2812_v34  ;;  %v1422_v60 = vmul.f32 %v3239_v25, %v2784_v63 }
 0x16a   : > { %v1194_v1 = vmax.f32 %v1178_v44, 0.0  ;;  %v1629_v17 = vadd.f32 %v1613_v0, %v1581_v49  ;;  %v1630_v3 = vadd.f32 %v1614_v2, %v1582_v53  ;;  %v1423_v27 = vmul.f32 %v3245_v16, %v2784_v63 }
 0x16b   : > { %v1195_v10 = vmax.f32 %v1179_v29, 0.0  ;;  %v1438_v61 = vadd.f32 %v3306_v20, %v1422_v60  ;;  %v1470_v25 = vmul.f32 %v3247_v30, %v2798_v8  ;;  %v1518_v35 = vmul.f32 %v1142_v54, %v2803_v14  ;;  %v3317_v30 = vld [vmem:[#allocation2 + $0x167] sm:$0xff] }
 0x16c   : > { %v1677_v58 = vadd.f32 %v1661_v36, %v1629_v17  ;;  %v1678_v59 = vadd.f32 %v1662_v4, %v1630_v3  ;;  %v1439_v62 = vadd.f32 %v3306_v20, %v1423_v27  ;;  %v1471_v39 = vmul.f32 %v1455_v7, %v2798_v8 }
 0x16d   : > { %v1203_v16 = vpack.c.bf16 %v1195_v10, %v1194_v1  ;;  %v1806_v13 = vmul.f32 %v2869_v19, %v1790_v41  ;;  %v1807_v48 = vmul.f32 %v2869_v19, %v1791_v47  ;;  %v1486_v43 = vadd.f32 %v1470_v25, %v1438_v61  ;;  %v3325_v19 = vld [vmem:[#allocation2 + $0x16f] sm:$0xff] }
 0x16e   : > { %v1726_v32 = vadd.f32 %v1710_v55, %v1677_v58  ;;  %v1727_v31 = vadd.f32 %v1711_v40, %v1678_v59  ;;  %v1487_v12 = vadd.f32 %v1471_v39, %v1439_v62  ;;  %v1519_v11 = vmul.f32 %v1143_v5, %v2803_v14  ;;  %v1793_v59 = vld [vmem:[#allocation2 + $0x171] sm:$0xff] }
 0x16f   : > { %2289 = vmatmul.mubr.bf16.gmra.mxu1 %v1203_v16  ;;  %v1534_v54 = vadd.f32 %v1518_v35, %v1486_v43  ;;  %v1567_v50 = vmul.f32 %v3277_v57, %v2815_v38  ;;  %v1568_v52 = vmul.f32 %v3279_v22, %v2815_v38  ;;  %v1615_v6 = vmul.f32 %v3285_v37, %v2807_v24 }
 0x170   : > { %v1774_v15 = vadd.f32 %v1758_v18, %v1726_v32  ;;  %v1775_v21 = vadd.f32 %v1759_v51, %v1727_v31  ;;  %v1535_v26 = vadd.f32 %v1519_v11, %v1487_v12  ;;  %v1616_v5 = vmul.f32 %v3287_v9, %v2807_v24  ;;  %v1698_v31 = vld [vmem:[#allocation2 + $0x187] sm:$0xff]  ;;  %v3363_v12 = vld [vmem:[#allocation2 + $0x18f] sm:$0xff] }
 0x171   : > { %v1583_v0 = vadd.f32 %v1567_v50, %v1534_v54  ;;  %v1663_v2 = vmul.f32 %v1790_v41, %v2822_v45  ;;  %v1664_v56 = vmul.f32 %v1791_v47, %v2822_v45  ;;  %v1712_v44 = vmul.f32 %v3317_v30, %v2818_v42 }
 0x172   : > { %v1822_v36 = vadd.f32 %v1806_v13, %v1774_v15  ;;  %v1823_v4 = vadd.f32 %v1807_v48, %v1775_v21  ;;  %v1584_v49 = vadd.f32 %v1568_v52, %v1535_v26  ;;  %v1713_v53 = vmul.f32 %v3325_v19, %v2818_v42 }
 0x173   : > { %v1631_v55 = vadd.f32 %v1615_v6, %v1583_v0  ;;  %v1760_v40 = vmul.f32 %v3329_v33, %v2812_v34  ;;  %v1424_v29 = vmul.f32 %v3277_v57, %v2784_v63  ;;  %v1425_v18 = vmul.f32 %v3279_v22, %v2784_v63  ;;  %v1792_v57 = vld [vmem:[#allocation2 + $0x169] sm:$0xff] }
 0x174   : > { %v1838_v51 = vmax.f32 %v1822_v36, 0.0  ;;  %v1839_v60 = vmax.f32 %v1823_v4, 0.0  ;;  %v1632_v7 = vadd.f32 %v1616_v5, %v1584_v49  ;;  %v1472_v1 = vmul.f32 %v3285_v37, %v2798_v8  ;;  %v3370_v6 = vld [vmem:[#allocation2 + $0x188] sm:$0xff]  ;;  %v1747_v49 = vld [vmem:[#allocation2 + $0x190] sm:$0xff] }
 0x175   : > { %v1679_v17 = vadd.f32 %v1663_v2, %v1631_v55  ;;  %v1440_v3 = vadd.f32 %v3306_v20, %v1424_v29  ;;  %v1441_v27 = vadd.f32 %v3306_v20, %v1425_v18  ;;  %v1473_v10 = vmul.f32 %v3287_v9, %v2798_v8  ;;  %v1459_v55 = vld [vmem:[#allocation2 + $0x170] sm:$0xff] }
 0x176   : > { %v1854_v61 = vpack.c.bf16 %v1839_v60, %v1838_v51  ;;  %v1680_v25 = vadd.f32 %v1664_v56, %v1632_v7  ;;  %v1520_v35 = vmul.f32 %v1790_v41, %v2803_v14  ;;  %v1521_v22 = vmul.f32 %v1791_v47, %v2803_v14  ;;  %v3360_v41 = vld [vmem:[%s3699_s3 + $0x8] ss:$0 sm:$0xff]  ;;  %v1794_v18 = vld [vmem:[#allocation2 + $0x189] sm:$0xff] }
 0x177   : > { %v1728_v58 = vadd.f32 %v1712_v44, %v1679_v17  ;;  %v1488_v62 = vadd.f32 %v1472_v1, %v1440_v3  ;;  %v1489_v39 = vadd.f32 %v1473_v10, %v1441_v27  ;;  %v1569_v37 = vmul.f32 %v3317_v30, %v2815_v38  ;;  %v1795_v17 = vld [vmem:[#allocation2 + $0x191] sm:$0xff] }
 0x178   : > { %2308 = vmatprep.mubr.bf16.mxu0 %v1854_v61  ;;  %v1729_v16 = vadd.f32 %v1713_v53, %v1680_v25  ;;  %v1761_v13 = vmul.f32 %v2812_v34, %v3044_v46  ;;  %v1570_v9 = vmul.f32 %v3325_v19, %v2815_v38  ;;  %v1808_v47 = vmul.f32 %v3360_v41, %v1792_v57 }
 0x179   : > { %v1776_v48 = vadd.f32 %v1760_v40, %v1728_v58  ;;  %v1536_v43 = vadd.f32 %v1520_v35, %v1488_v62  ;;  %v1537_v32 = vadd.f32 %v1521_v22, %v1489_v39  ;;  %v1809_v54 = vmul.f32 %v3360_v41, %v1793_v59 }
 0x17a   : > { %v1777_v11 = vadd.f32 %v1761_v13, %v1729_v16  ;;  %v1617_v50 = vmul.f32 %v3329_v33, %v2807_v24  ;;  %v1618_v52 = vmul.f32 %v2807_v24, %v3044_v46  ;;  %v1665_v5 = vmul.f32 %v1792_v57, %v2822_v45 }
 0x17b   : > { %v1824_v15 = vadd.f32 %v1808_v47, %v1776_v48  ;;  %v1585_v21 = vadd.f32 %v1569_v37, %v1536_v43  ;;  %v1586_v26 = vadd.f32 %v1570_v9, %v1537_v32  ;;  %v1666_v2 = vmul.f32 %v1793_v59, %v2822_v45  ;;  %v1700_v48 = vld [vmem:[#allocation2 + $0x1a7] sm:$0xff]  ;;  %v3396_v47 = vld [vmem:[#allocation2 + $0x1af] sm:$0xff] }
 0x17c   : > { %v1825_v0 = vadd.f32 %v1809_v54, %v1777_v11  ;;  %v1714_v56 = vmul.f32 %v1698_v31, %v2818_v42  ;;  %v1715_v44 = vmul.f32 %v3363_v12, %v2818_v42  ;;  %v1762_v46 = vmul.f32 %v3370_v6, %v2812_v34 }
 0x17d   : > { %v1633_v36 = vadd.f32 %v1617_v50, %v1585_v21  ;;  %v1634_v4 = vadd.f32 %v1618_v52, %v1586_v26  ;;  %v1426_v53 = vmul.f32 %v3317_v30, %v2784_v63  ;;  %v1840_v40 = vmax.f32 %v1824_v15, 0.0 }
 0x17e   : > { %v1841_v29 = vmax.f32 %v1825_v0, 0.0  ;;  %v1427_v51 = vmul.f32 %v3325_v19, %v2784_v63  ;;  %v1474_v60 = vmul.f32 %v3329_v33, %v2798_v8  ;;  %v1522_v27 = vmul.f32 %v1792_v57, %v2803_v14 }
 0x17f   : > { %v1681_v7 = vadd.f32 %v1665_v5, %v1633_v36  ;;  %v1682_v1 = vadd.f32 %v1666_v2, %v1634_v4  ;;  %v1442_v3 = vadd.f32 %v3306_v20, %v1426_v53  ;;  %v1763_v30 = vmul.f32 %v1747_v49, %v2812_v34  ;;  %v1748_v36 = vld [vmem:[#allocation2 + $0x1a8] sm:$0xff] }
 0x180   : > { %v1855_v10 = vpack.c.bf16 %v1841_v29, %v1840_v40  ;;  %v1443_v61 = vadd.f32 %v3306_v20, %v1427_v51  ;;  %v1475_v25 = vmul.f32 %v1459_v55, %v2798_v8  ;;  %v1810_v19 = vmul.f32 %v3360_v41, %v1794_v18 }
 0x181   : > { %v1730_v35 = vadd.f32 %v1714_v56, %v1681_v7  ;;  %v1731_v22 = vadd.f32 %v1715_v44, %v1682_v1  ;;  %v1490_v58 = vadd.f32 %v1474_v60, %v1442_v3  ;;  %v1811_v33 = vmul.f32 %v3360_v41, %v1795_v17  ;;  %v1796_v60 = vld [vmem:[#allocation2 + $0x1a9] sm:$0xff] }
 0x182   : > { %2309 = vmatmul.mubr.bf16.vlgmr.msra.gmra.mxu0 %v1855_v10  ;;  %v1491_v62 = vadd.f32 %v1475_v25, %v1443_v61  ;;  %v1523_v39 = vmul.f32 %v1793_v59, %v2803_v14  ;;  %v1571_v57 = vmul.f32 %v1698_v31, %v2815_v38  ;;  %v1572_v9 = vmul.f32 %v3363_v12, %v2815_v38 }
 0x183   : > { %v1778_v37 = vadd.f32 %v1762_v46, %v1730_v35  ;;  %v1779_v16 = vadd.f32 %v1763_v30, %v1731_v22  ;;  %v1538_v13 = vadd.f32 %v1522_v27, %v1490_v58  ;;  %v1619_v32 = vmul.f32 %v3370_v6, %v2807_v24  ;;  %v1797_v27 = vld [vmem:[#allocation2 + $0x1b1] sm:$0xff] }
 0x184   : > { %v1539_v43 = vadd.f32 %v1523_v39, %v1491_v62  ;;  %v1620_v11 = vmul.f32 %v1747_v49, %v2807_v24  ;;  %v1667_v54 = vmul.f32 %v1794_v18, %v2822_v45  ;;  %v1668_v15 = vmul.f32 %v1795_v17, %v2822_v45 }
 0x185   : > { %v1826_v59 = vadd.f32 %v1810_v19, %v1778_v37  ;;  %v1827_v50 = vadd.f32 %v1811_v33, %v1779_v16  ;;  %v1587_v52 = vadd.f32 %v1571_v57, %v1538_v13  ;;  %v1716_v26 = vmul.f32 %v1700_v48, %v2818_v42  ;;  %v3423_v19 = vld [vmem:[#allocation2 + $0x1c7] sm:$0xff]  ;;  %v3427_v57 = vld [vmem:[#allocation2 + $0x1cf] sm:$0xff] }
 0x186   : > { %v1588_v21 = vadd.f32 %v1572_v9, %v1539_v43  ;;  %v1717_v5 = vmul.f32 %v3396_v47, %v2818_v42  ;;  %v1428_v0 = vmul.f32 %v1698_v31, %v2784_v63  ;;  %v1429_v4 = vmul.f32 %v3363_v12, %v2784_v63  ;;  %v1750_v9 = vld [vmem:[#allocation2 + $0x1c8] sm:$0xff] }
 0x187   : > { %v1842_v2 = vmax.f32 %v1826_v59, 0.0  ;;  %v1843_v56 = vmax.f32 %v1827_v50, 0.0  ;;  %v1635_v44 = vadd.f32 %v1619_v32, %v1587_v52  ;;  %v1476_v55 = vmul.f32 %v3370_v6, %v2798_v8 }
 0x188   : > { %v1636_v46 = vadd.f32 %v1620_v11, %v1588_v21  ;;  %v1444_v53 = vadd.f32 %v3306_v20, %v1428_v0  ;;  %v1477_v40 = vmul.f32 %v1747_v49, %v2798_v8  ;;  %v1445_v31 = vadd.f32 %v3306_v20, %v1429_v4  ;;  %v1798_v4 = vld [vmem:[#allocation2 + $0x1c9] sm:$0xff] }
 0x189   : > { %v1856_v29 = vpack.c.bf16 %v1843_v56, %v1842_v2  ;;  %v1683_v51 = vadd.f32 %v1667_v54, %v1635_v44  ;;  %v1524_v7 = vmul.f32 %v1794_v18, %v2803_v14  ;;  %v1764_v3 = vmul.f32 %v1748_v36, %v2812_v34 }
 0x18a   : > { %v1684_v1 = vadd.f32 %v1668_v15, %v1636_v46  ;;  %v1492_v12 = vadd.f32 %v1476_v55, %v1444_v53  ;;  %v1573_v10 = vmul.f32 %v1700_v48, %v2815_v38  ;;  %v1493_v61 = vadd.f32 %v1477_v40, %v1445_v31  ;;  %v1799_v40 = vld [vmem:[#allocation2 + $0x1d1] sm:$0xff] }
 0x18b   : > { %2312 = vmatprep.mubr.bf16.mxu1 %v1856_v29  ;;  %v1732_v30 = vadd.f32 %v1716_v26, %v1683_v51  ;;  %v1525_v6 = vmul.f32 %v1795_v17, %v2803_v14  ;;  %v1574_v49 = vmul.f32 %v3396_v47, %v2815_v38  ;;  %v1765_v35 = vmul.f32 %v2812_v34, %v3130_v28 }
 0x18c   : > { %v1733_v25 = vadd.f32 %v1717_v5, %v1684_v1  ;;  %v1812_v18 = vmul.f32 %v3360_v41, %v1796_v60  ;;  %v1540_v22 = vadd.f32 %v1524_v7, %v1492_v12  ;;  %v1813_v33 = vmul.f32 %v3360_v41, %v1797_v27  ;;  %v1751_v5 = vld [vmem:[#allocation2 + $0x1d0] sm:$0xff] }
 0x18d   : > { %v1780_v58 = vadd.f32 %v1764_v3, %v1732_v30  ;;  %v1541_v62 = vadd.f32 %v1525_v6, %v1493_v61  ;;  %v1621_v39 = vmul.f32 %v1748_v36, %v2807_v24  ;;  %v1622_v16 = vmul.f32 %v2807_v24, %v3130_v28 }
 0x18e   : > { %v1781_v17 = vadd.f32 %v1765_v35, %v1733_v25  ;;  %v1589_v37 = vadd.f32 %v1573_v10, %v1540_v22  ;;  %v1669_v13 = vmul.f32 %v1796_v60, %v2822_v45  ;;  %v1670_v11 = vmul.f32 %v1797_v27, %v2822_v45  ;;  %v1705_v22 = vld [vmem:[#allocation2 + $0x1ef] sm:$0xff] }
 0x18f   : > { %v1828_v43 = vadd.f32 %v1812_v18, %v1780_v58  ;;  %v1590_v32 = vadd.f32 %v1574_v49, %v1541_v62  ;;  %v1718_v54 = vmul.f32 %v3423_v19, %v2818_v42  ;;  %v1719_v52 = vmul.f32 %v3427_v57, %v2818_v42  ;;  %v1752_v58 = vld [vmem:[#allocation2 + $0x1e8] sm:$0xff] }
 0x190   : > { %v1829_v59 = vadd.f32 %v1813_v33, %v1781_v17  ;;  %v1637_v50 = vadd.f32 %v1621_v39, %v1589_v37  ;;  %v1430_v15 = vmul.f32 %v1700_v48, %v2784_v63  ;;  %v1766_v0 = vmul.f32 %v1750_v9, %v2812_v34 }
 0x191   : > { %v1844_v21 = vmax.f32 %v1828_v43, 0.0  ;;  %v1638_v26 = vadd.f32 %v1622_v16, %v1590_v32  ;;  %v1431_v2 = vmul.f32 %v3396_v47, %v2784_v63  ;;  %v1478_v53 = vmul.f32 %v1748_v36, %v2798_v8 }
 0x192   : > { %v1845_v56 = vmax.f32 %v1829_v59, 0.0  ;;  %v1685_v44 = vadd.f32 %v1669_v13, %v1637_v50  ;;  %v1446_v46 = vadd.f32 %v3306_v20, %v1430_v15  ;;  %v1479_v48 = vmul.f32 %v2798_v8, %v3130_v28 }
 0x193   : > { %v1686_v55 = vadd.f32 %v1670_v11, %v1638_v26  ;;  %v1447_v29 = vadd.f32 %v3306_v20, %v1431_v2  ;;  %v1526_v51 = vmul.f32 %v1796_v60, %v2803_v14  ;;  %v1767_v47 = vmul.f32 %v1751_v5, %v2812_v34  ;;  %v1704_v60 = vld [vmem:[#allocation2 + $0x1e7] sm:$0xff] }
 0x194   : > { %v1857_v31 = vpack.c.bf16 %v1845_v56, %v1844_v21  ;;  %v1734_v7 = vadd.f32 %v1718_v54, %v1685_v44  ;;  %v1494_v1 = vadd.f32 %v1478_v53, %v1446_v46  ;;  %v1814_v12 = vmul.f32 %v3360_v41, %v1798_v4  ;;  %v1800_v46 = vld [vmem:[#allocation2 + $0x1e9] sm:$0xff] }
 0x195   : > { %v1735_v3 = vadd.f32 %v1719_v52, %v1686_v55  ;;  %v1495_v10 = vadd.f32 %v1479_v48, %v1447_v29  ;;  %v1527_v36 = vmul.f32 %v1797_v27, %v2803_v14  ;;  %v1815_v61 = vmul.f32 %v3360_v41, %v1799_v40  ;;  %v1801_v48 = vld [vmem:[#allocation2 + $0x1f1] sm:$0xff] }
 0x196   : > { %2313 = vmatmul.mubr.bf16.vlgmr.msra.gmra.mxu1 %v1857_v31  ;;  %v1782_v30 = vadd.f32 %v1766_v0, %v1734_v7  ;;  %v1542_v6 = vadd.f32 %v1526_v51, %v1494_v1  ;;  %v1575_v28 = vmul.f32 %v3423_v19, %v2815_v38  ;;  %v1576_v35 = vmul.f32 %v3427_v57, %v2815_v38 }
 0x197   : > { %v1783_v49 = vadd.f32 %v1767_v47, %v1735_v3  ;;  %v1543_v25 = vadd.f32 %v1527_v36, %v1495_v10  ;;  %v1623_v18 = vmul.f32 %v1750_v9, %v2807_v24  ;;  %v1624_v62 = vmul.f32 %v1751_v5, %v2807_v24 }
 0x198   : > { %v1830_v33 = vadd.f32 %v1814_v12, %v1782_v30  ;;  %v1591_v27 = vadd.f32 %v1575_v28, %v1542_v6  ;;  %v1671_v39 = vmul.f32 %v1798_v4, %v2822_v45  ;;  %v1672_v16 = vmul.f32 %v1799_v40, %v2822_v45 }
 0x199   : > { %v1831_v17 = vadd.f32 %v1815_v61, %v1783_v49  ;;  %v1592_v37 = vadd.f32 %v1576_v35, %v1543_v25  ;;  %v1720_v13 = vmul.f32 %v1704_v60, %v2818_v42  ;;  %v1721_v32 = vmul.f32 %v1705_v22, %v2818_v42 }
 0x19a   : > { %v1639_v43 = vadd.f32 %v1623_v18, %v1591_v27  ;;  %v1768_v11 = vmul.f32 %v1752_v58, %v2812_v34  ;;  %v1432_v54 = vmul.f32 %v3423_v19, %v2784_v63  ;;  %v1846_v59 = vmax.f32 %v1830_v33, 0.0 }
 0x19b   : > { %v1847_v50 = vmax.f32 %v1831_v17, 0.0  ;;  %v1640_v52 = vadd.f32 %v1624_v62, %v1592_v37  ;;  %v1433_v15 = vmul.f32 %v3427_v57, %v2784_v63  ;;  %v1480_v0 = vmul.f32 %v1750_v9, %v2798_v8  ;;  %v1707_v62 = vld [vmem:[#allocation2 + $0x20f] sm:$0xff] }
 0x19c   : > { %v1687_v21 = vadd.f32 %v1671_v39, %v1639_v43  ;;  %v1448_v26 = vadd.f32 %v3306_v20, %v1432_v54  ;;  %v1528_v2 = vmul.f32 %v1798_v4, %v2803_v14  ;;  %v1481_v19 = vmul.f32 %v1751_v5, %v2798_v8  ;;  %v1706_v5 = vld [vmem:[#allocation2 + $0x207] sm:$0xff]  ;;  %v1755_v54 = vld [vmem:[#allocation2 + $0x210] sm:$0xff] }
 0x19d   : > { %v1858_v56 = vpack.c.bf16 %v1847_v50, %v1846_v59  ;;  %v1688_v44 = vadd.f32 %v1672_v16, %v1640_v52  ;;  %v1449_v53 = vadd.f32 %v3306_v20, %v1433_v15  ;;  %v1769_v29 = vmul.f32 %v2812_v34, %v3222_v23  ;;  %v1754_v39 = vld [vmem:[#allocation2 + $0x208] sm:$0xff] }
 0x19e   : > { %v1736_v55 = vadd.f32 %v1720_v13, %v1687_v21  ;;  %v1496_v57 = vadd.f32 %v1480_v0, %v1448_v26  ;;  %v1577_v51 = vmul.f32 %v1704_v60, %v2815_v38  ;;  %v1529_v4 = vmul.f32 %v1799_v40, %v2803_v14  ;;  %v1802_v59 = vld [vmem:[#allocation2 + $0x209] sm:$0xff] }
 0x19f   : > { %2316 = vmatprep.mubr.bf16.mxu1 %v1858_v56  ;;  %v1737_v31 = vadd.f32 %v1721_v32, %v1688_v44  ;;  %v1497_v9 = vadd.f32 %v1481_v19, %v1449_v53  ;;  %v1578_v7 = vmul.f32 %v1705_v22, %v2815_v38  ;;  %v1816_v1 = vmul.f32 %v3360_v41, %v1800_v46 }
 0x1a0   : > { %v1784_v47 = vadd.f32 %v1768_v11, %v1736_v55  ;;  %v1544_v3 = vadd.f32 %v1528_v2, %v1496_v57  ;;  %v1817_v10 = vmul.f32 %v3360_v41, %v1801_v48  ;;  %v1625_v30 = vmul.f32 %v1752_v58, %v2807_v24 }
 0x1a1   : > { %v1785_v12 = vadd.f32 %v1769_v29, %v1737_v31  ;;  %v1545_v36 = vadd.f32 %v1529_v4, %v1497_v9  ;;  %v1626_v28 = vmul.f32 %v2807_v24, %v3222_v23  ;;  %v1673_v40 = vmul.f32 %v1800_v46, %v2822_v45  ;;  %v1708_v31 = vld [vmem:[#allocation2 + $0x227] sm:$0xff] }
 0x1a2   : > { %v1832_v61 = vadd.f32 %v1816_v1, %v1784_v47  ;;  %v1593_v6 = vadd.f32 %v1577_v51, %v1544_v3  ;;  %v1674_v35 = vmul.f32 %v1801_v48, %v2822_v45  ;;  %v1722_v18 = vmul.f32 %v1706_v5, %v2818_v42 }
 0x1a3   : > { %v1833_v49 = vadd.f32 %v1817_v10, %v1785_v12  ;;  %v1594_v25 = vadd.f32 %v1578_v7, %v1545_v36  ;;  %v1434_v17 = vmul.f32 %v1704_v60, %v2784_v63  ;;  %v1435_v37 = vmul.f32 %v1705_v22, %v2784_v63 }
 0x1a4   : > { %v1848_v33 = vmax.f32 %v1832_v61, 0.0  ;;  %v1641_v27 = vadd.f32 %v1625_v30, %v1593_v6  ;;  %v1482_v43 = vmul.f32 %v1752_v58, %v2798_v8  ;;  %v1483_v32 = vmul.f32 %v2798_v8, %v3222_v23  ;;  %v1803_v58 = vld [vmem:[#allocation2 + $0x211] sm:$0xff]  ;;  %v1804_v61 = vld [vmem:[#allocation2 + $0x229] sm:$0xff] }
 0x1a5   : > { %v1849_v16 = vmax.f32 %v1833_v49, 0.0  ;;  %v1642_v13 = vadd.f32 %v1626_v28, %v1594_v25  ;;  %v1450_v50 = vadd.f32 %v3306_v20, %v1434_v17  ;;  %v1451_v52 = vadd.f32 %v3306_v20, %v1435_v37  ;;  %v1805_v6 = vld [vmem:[#allocation2 + $0x231] sm:$0xff]  ;;  %v2403_v49 = vld [vmem:[#allocation2] sm:$0xff] }
 0x1a6   : > { %v1689_v11 = vadd.f32 %v1673_v40, %v1641_v27  ;;  %v1530_v15 = vmul.f32 %v1800_v46, %v2803_v14  ;;  %v1723_v63 = vmul.f32 %v1707_v62, %v2818_v42  ;;  %v1770_v22 = vmul.f32 %v1754_v39, %v2812_v34 }
 0x1a7   : > { %v1859_v21 = vpack.c.bf16 %v1849_v16, %v1848_v33  ;;  %v1690_v60 = vadd.f32 %v1674_v35, %v1642_v13  ;;  %v1498_v0 = vadd.f32 %v1482_v43, %v1450_v50  ;;  %v1499_v2 = vadd.f32 %v1483_v32, %v1451_v52  ;;  %v1357_v43 = vld [vmem:[%s2648_s15 + $0x10] sm:$0xff]  ;;  %v1358_v52 = vld [vmem:[%s2648_s15 + $0x18] sm:$0xff] }
 0x1a8   : > { %v1738_v26 = vadd.f32 %v1722_v18, %v1689_v11  ;;  %v1531_v8 = vmul.f32 %v1801_v48, %v2803_v14  ;;  %v1771_v56 = vmul.f32 %v1755_v54, %v2812_v34  ;;  %v1818_v20 = vmul.f32 %v3360_v41, %v1802_v59  ;;  %v1709_v14 = vld [vmem:[#allocation2 + $0x22f] sm:$0xff]  ;;  %v1355_v11 = vld [vmem:[%s2648_s15] sm:$0xff] }
 0x1a9   : > { %2317 = vmatmul.mubr.bf16.gmra.mxu1 %v1859_v21  ;;  %v1739_v23 = vadd.f32 %v1723_v63, %v1690_v60  ;;  %v1579_v44 = vmul.f32 %v1706_v5, %v2815_v38  ;;  %v1546_v53 = vadd.f32 %v1530_v15, %v1498_v0  ;;  %v1580_v55 = vmul.f32 %v1707_v62, %v2815_v38  ;;  %v1356_v63 = vld [vmem:[%s2648_s15 + $0x8] sm:$0xff] }
 0x1aa   : > { %v1786_v46 = vadd.f32 %v1770_v22, %v1738_v26  ;;  %v1547_v19 = vadd.f32 %v1531_v8, %v1499_v2  ;;  %v1819_v57 = vmul.f32 %v3360_v41, %v1803_v58  ;;  %v1627_v51 = vmul.f32 %v1754_v39, %v2807_v24  ;;  %v1361_v2 = vld [vmem:[%s2648_s15 + $0x30] sm:$0xff] }
 0x1ab   : > { %v1787_v29 = vadd.f32 %v1771_v56, %v1739_v23  ;;  %v1595_v9 = vadd.f32 %v1579_v44, %v1546_v53  ;;  %v1628_v7 = vmul.f32 %v1755_v54, %v2807_v24  ;;  %v1675_v1 = vmul.f32 %v1802_v59, %v2822_v45  ;;  %v1359_v56 = vld [vmem:[%s2648_s15 + $0x20] sm:$0xff]  ;;  %v1362_v53 = vld [vmem:[%s2648_s15 + $0x38] sm:$0xff] }
 0x1ac   : > { %v1834_v48 = vadd.f32 %v1818_v20, %v1786_v46  ;;  %v1596_v4 = vadd.f32 %v1580_v55, %v1547_v19  ;;  %v1676_v3 = vmul.f32 %v1803_v58, %v2822_v45  ;;  %v1724_v38 = vmul.f32 %v1708_v31, %v2818_v42 }
 0x1ad   : > { %v1835_v47 = vadd.f32 %v1819_v57, %v1787_v29  ;;  %v1643_v5 = vadd.f32 %v1627_v51, %v1595_v9  ;;  %v1725_v10 = vmul.f32 %v1709_v14, %v2818_v42  ;;  %v1772_v24 = vmul.f32 %v2403_v49, %v2812_v34  ;;  %v3512_v34 = vld [vmem:[%s3702_s6] ss:$0 sm:$0xff]  ;;  %v1360_v57 = vld [vmem:[%s2648_s15 + $0x28] sm:$0xff]  ;;  %v1365_v9 = vld [vmem:[%s2648_s15 + $0x50] sm:$0xff] }
 0x1ae   : > { %v1644_v12 = vadd.f32 %v1628_v7, %v1596_v4  ;;  %v1850_v36 = vmax.f32 %v1834_v48, 0.0  ;;  %v1820_v45 = vmul.f32 %v3360_v41, %v1804_v61  ;;  %v1821_v33 = vmul.f32 %v3360_v41, %v1805_v6  ;;  %v1369_v49 = vld [vmem:[%s2648_s15 + $0x70] sm:$0xff] }
 0x1af   : > { %v1851_v30 = vmax.f32 %v1835_v47, 0.0  ;;  %v1691_v28 = vadd.f32 %v1675_v1, %v1643_v5  ;;  %v1363_v47 = vld [vmem:[%s2648_s15 + $0x40] sm:$0xff] }
 0x1b0   : > { %v1692_v40 = vadd.f32 %v1676_v3, %v1644_v12  ;;  %v1366_v12 = vld [vmem:[%s2648_s15 + $0x58] sm:$0xff] }
 0x1b1   : > { %v1860_v25 = vpack.c.bf16 %v1851_v30, %v1850_v36  ;;  %v1740_v35 = vadd.f32 %v1724_v38, %v1691_v28  ;;  %v1364_v30 = vld [vmem:[%s2648_s15 + $0x48] sm:$0xff] }
 0x1b2   : > { %v1741_v18 = vadd.f32 %v1725_v10, %v1692_v40 }
 0x1b3   : > { %2320 = vmatprep.mubr.bf16.mxu1 %v1860_v25  ;;  %v1788_v42 = vadd.f32 %v1772_v24, %v1740_v35  ;;  %v1367_v35 = vld [vmem:[%s2648_s15 + $0x60] sm:$0xff] }
 0x1b4   : > { %v1789_v27 = vadd.f32 %v1772_v24, %v1741_v18 }
 0x1b5   : > { %v1836_v62 = vadd.f32 %v1820_v45, %v1788_v42  ;;  %v1370_v42 = vld [vmem:[%s2648_s15 + $0x78] sm:$0xff] }
 0x1b6   : > { %v1837_v39 = vadd.f32 %v1821_v33, %v1789_v27 }
 0x1b7   : > { %v1852_v17 = vmax.f32 %v1836_v62, 0.0 }
 0x1b8   : > { %v1853_v37 = vmax.f32 %v1837_v39, 0.0 }
 0x1ba   : > { %v1861_v16 = vpack.c.bf16 %v1853_v37, %v1852_v17  ;;  %v1368_v17 = vld [vmem:[%s2648_s15 + $0x68] sm:$0xff] }
 0x1bc   : > { %2321 = vmatmul.mubr.bf16.gmra.mxu1 %v1861_v16 }
 0x1ed   : > { %v2278_v13 = vpop.f32.mrf.mxu1 }
 0x1ee   : > { %v1301_v41 = vadd.f32 %v2278_v13, %v3512_v34 }
 0x1ef   : > { %v1292_v32 = vpop.f32.mrf.mxu1 }
 0x1f0   : > { %v1373_v54 = vadd.f32 %v1357_v43, %v1301_v41  ;;  %v1293_v59 = vadd.f32 %v3512_v34, %v1292_v32  ;;  %v2137_v41 = vld [vmem:[%s2648_s15 + $0x90] sm:$0xff] }
 0x1f1   : > { %v2279_v50 = vpop.f32.mrf.mxu1 }
 0x1f2   : > { %1389 = vst.msk [vmem:[%s3521_s22 + $0x10] sm:$0xff] %vm411_vm0, %v1373_v54  ;;  %v1371_v15 = vadd.f32 %v1355_v11, %v1293_v59  ;;  %v1304_v21 = vadd.f32 %v2279_v50, %v3512_v34  ;;  %v2135_v54 = vld [vmem:[%s2648_s15 + $0x80] sm:$0xff] }
 0x1f3   : > { %v1295_v60 = vpop.f32.mrf.mxu1 }
 0x1f4   : > { %1387 = vst.msk [vmem:[%s3521_s22] sm:$0xff] %vm411_vm0, %v1371_v15  ;;  %v1374_v22 = vadd.f32 %v1358_v52, %v1304_v21  ;;  %v1296_v26 = vadd.f32 %v3512_v34, %v1295_v60  ;;  %v2138_v15 = vld [vmem:[%s2648_s15 + $0x98] sm:$0xff] }
 0x1f6   : > { %1390 = vst.msk [vmem:[%s3521_s22 + $0x18] sm:$0xff] %vm411_vm0, %v1374_v22  ;;  %v1372_v58 = vadd.f32 %v1356_v63, %v1296_v26  ;;  %v2136_v22 = vld [vmem:[%s2648_s15 + $0x88] sm:$0xff] }
 0x1f8   : > { %1388 = vst.msk [vmem:[%s3521_s22 + $0x8] sm:$0xff] %vm411_vm0, %v1372_v58 }
 0x204   : > { %v2282_v0 = vpop.f32.mrf.mxu1 }
 0x205   : > { %v1317_v8 = vadd.f32 %v2282_v0, %v3512_v34 }
 0x206   : > { %v1308_v23 = vpop.f32.mrf.mxu1 }
 0x207   : > { %v1377_v20 = vadd.f32 %v1361_v2, %v1317_v8  ;;  %v1309_v44 = vadd.f32 %v3512_v34, %v1308_v23  ;;  %v2141_v8 = vld [vmem:[%s2648_s15 + $0xb0] sm:$0xff] }
 0x208   : > { %v2283_v46 = vpop.f32.mrf.mxu1 }
 0x209   : > { %1393 = vst.msk [vmem:[%s3521_s22 + $0x30] sm:$0xff] %vm411_vm0, %v1377_v20  ;;  %v1375_v19 = vadd.f32 %v1359_v56, %v1309_v44  ;;  %v1320_v55 = vadd.f32 %v2283_v46, %v3512_v34  ;;  %v2139_v20 = vld [vmem:[%s2648_s15 + $0xa0] sm:$0xff] }
 0x20a   : > { %v1311_v29 = vpop.f32.mrf.mxu1 }
 0x20b   : > { %1391 = vst.msk [vmem:[%s3521_s22 + $0x20] sm:$0xff] %vm411_vm0, %v1375_v19  ;;  %v1378_v51 = vadd.f32 %v1362_v53, %v1320_v55  ;;  %v1312_v31 = vadd.f32 %v3512_v34, %v1311_v29  ;;  %v2142_v19 = vld [vmem:[%s2648_s15 + $0xb8] sm:$0xff] }
 0x20d   : > { %1394 = vst.msk [vmem:[%s3521_s22 + $0x38] sm:$0xff] %vm411_vm0, %v1378_v51  ;;  %v1376_v14 = vadd.f32 %v1360_v57, %v1312_v31  ;;  %v2140_v51 = vld [vmem:[%s2648_s15 + $0xa8] sm:$0xff] }
 0x20f   : > { %1392 = vst.msk [vmem:[%s3521_s22 + $0x28] sm:$0xff] %vm411_vm0, %v1376_v14 }
 0x21a   : > { %v2286_v48 = vpop.f32.mrf.mxu1 }
 0x21b   : > { %v1333_v4 = vadd.f32 %v2286_v48, %v3512_v34 }
 0x21c   : > { %v1324_v7 = vpop.f32.mrf.mxu1 }
 0x21d   : > { %v1381_v1 = vadd.f32 %v1365_v9, %v1333_v4  ;;  %v1325_v3 = vadd.f32 %v3512_v34, %v1324_v7  ;;  %v2145_v4 = vld [vmem:[%s2648_s15 + $0xd0] sm:$0xff] }
 0x21e   : > { %v2287_v5 = vpop.f32.mrf.mxu1 }
 0x21f   : > { %1397 = vst.msk [vmem:[%s3521_s22 + $0x50] sm:$0xff] %vm411_vm0, %v1381_v1  ;;  %v1379_v38 = vadd.f32 %v1363_v47, %v1325_v3  ;;  %v1336_v10 = vadd.f32 %v2287_v5, %v3512_v34  ;;  %v2143_v1 = vld [vmem:[%s2648_s15 + $0xc0] sm:$0xff] }
 0x220   : > { %v1327_v36 = vpop.f32.mrf.mxu1 }
 0x221   : > { %1395 = vst.msk [vmem:[%s3521_s22 + $0x40] sm:$0xff] %vm411_vm0, %v1379_v38  ;;  %v1382_v61 = vadd.f32 %v1366_v12, %v1336_v10  ;;  %v1328_v6 = vadd.f32 %v3512_v34, %v1327_v36  ;;  %v2146_v38 = vld [vmem:[%s2648_s15 + $0xd8] sm:$0xff] }
 0x223   : > { %1398 = vst.msk [vmem:[%s3521_s22 + $0x58] sm:$0xff] %vm411_vm0, %v1382_v61  ;;  %v1380_v28 = vadd.f32 %v1364_v30, %v1328_v6  ;;  %v2144_v61 = vld [vmem:[%s2648_s15 + $0xc8] sm:$0xff] }
 0x225   : > { %1396 = vst.msk [vmem:[%s3521_s22 + $0x48] sm:$0xff] %vm411_vm0, %v1380_v28 }
 0x22f   : > { %v2290_v40 = vpop.f32.mrf.mxu1 }
 0x230   : > { %v1349_v24 = vadd.f32 %v2290_v40, %v3512_v34 }
 0x231   : > { %v1340_v25 = vpop.f32.mrf.mxu1 }
 0x232   : > { %v1385_v18 = vadd.f32 %v1369_v49, %v1349_v24  ;;  %v1341_v45 = vadd.f32 %v3512_v34, %v1340_v25  ;;  %v2149_v24 = vld [vmem:[%s2648_s15 + $0xf0] sm:$0xff] }
 0x233   : > { %v2291_v33 = vpop.f32.mrf.mxu1 }
 0x234   : > { %1401 = vst.msk [vmem:[%s3521_s22 + $0x70] sm:$0xff] %vm411_vm0, %v1385_v18  ;;  %v1383_v27 = vadd.f32 %v1367_v35, %v1341_v45  ;;  %v1352_v62 = vadd.f32 %v2291_v33, %v3512_v34  ;;  %v2147_v18 = vld [vmem:[%s2648_s15 + $0xe0] sm:$0xff] }
 0x235   : > { %v1343_v39 = vpop.f32.mrf.mxu1 }
 0x236   : > { %1399 = vst.msk [vmem:[%s3521_s22 + $0x60] sm:$0xff] %vm411_vm0, %v1383_v27  ;;  %v1386_v37 = vadd.f32 %v1370_v42, %v1352_v62  ;;  %v1344_v16 = vadd.f32 %v3512_v34, %v1343_v39  ;;  %v2150_v27 = vld [vmem:[%s2648_s15 + $0xf8] sm:$0xff] }
 0x238   : > { %1402 = vst.msk [vmem:[%s3521_s22 + $0x78] sm:$0xff] %vm411_vm0, %v1386_v37  ;;  %v1384_v13 = vadd.f32 %v1368_v17, %v1344_v16  ;;  %v2148_v37 = vld [vmem:[%s2648_s15 + $0xe8] sm:$0xff]  ;;  %s2432_s15 = scalar_lea.vmem %s3649_s23, 4096 }
 0x239   : > { %p2433_p11 = scmp.ne.s32.totalorder %s3649_s23, %s2432_s15  ;;  %p2440_p7 = scmp.lt.s32.totalorder %s2438_s8, %s2432_s15 }
 0x23a   : > { %1400 = vst.msk [vmem:[%s3521_s22 + $0x68] sm:$0xff] %vm411_vm0, %v1384_v13 }
 0x23b   : > { %p2434_p13 = pnand %p2433_p11, %p3732_p12  ;;  %p2441_p8 = por %p2440_p7, %p2439_p5 }
 0x23d   : > { %p2435_p4 = pneg %p2434_p13 }
 0x23f   : > { %p2442_p10 = pnand %p2441_p8, %p2435_p4 }
 0x242   : > { %v2310_v43 = vpop.f32.mrf.mxu0 }
 0x243   : > { %v1905_v32 = vadd.f32 %v2310_v43, %v3512_v34 }
 0x244   : > { %v1896_v11 = vpop.f32.mrf.mxu0 }
 0x245   : > { %v1978_v59 = vadd.f32 %v2137_v41, %v1905_v32  ;;  %v1897_v50 = vadd.f32 %v3512_v34, %v1896_v11 }
 0x246   : > { %v2311_v52 = vpop.f32.mrf.mxu0 }
 0x247   : > { %2153 = vst.msk [vmem:[%s3521_s22 + $0x90] sm:$0xff] %vm411_vm0, %v1978_v59  ;;  %v1976_v21 = vadd.f32 %v2135_v54, %v1897_v50  ;;  %v1908_v60 = vadd.f32 %v2311_v52, %v3512_v34 }
 0x248   : > { %v1899_v63 = vpop.f32.mrf.mxu0 }
 0x249   : > { %2151 = vst.msk [vmem:[%s3521_s22 + $0x80] sm:$0xff] %vm411_vm0, %v1976_v21  ;;  %v1979_v26 = vadd.f32 %v2138_v15, %v1908_v60  ;;  %v1900_v58 = vadd.f32 %v3512_v34, %v1899_v63 }
 0x24b   : > { %2154 = vst.msk [vmem:[%s3521_s22 + $0x98] sm:$0xff] %vm411_vm0, %v1979_v26  ;;  %v1977_v0 = vadd.f32 %v2136_v22, %v1900_v58 }
 0x24d   : > { %2152 = vst.msk [vmem:[%s3521_s22 + $0x88] sm:$0xff] %vm411_vm0, %v1977_v0 }
 0x256   : > { %v2314_v2 = vpop.f32.mrf.mxu1 }
 0x257   : > { %v1921_v23 = vadd.f32 %v2314_v2, %v3512_v34 }
 0x258   : > { %v1912_v56 = vpop.f32.mrf.mxu1 }
 0x259   : > { %v1982_v44 = vadd.f32 %v2141_v8, %v1921_v23  ;;  %v1913_v46 = vadd.f32 %v3512_v34, %v1912_v56 }
 0x25a   : > { %v2315_v53 = vpop.f32.mrf.mxu1 }
 0x25b   : > { %2157 = vst.msk [vmem:[%s3521_s22 + $0xb0] sm:$0xff] %vm411_vm0, %v1982_v44  ;;  %v1980_v55 = vadd.f32 %v2139_v20, %v1913_v46  ;;  %v1924_v29 = vadd.f32 %v2315_v53, %v3512_v34 }
 0x25c   : > { %v1915_v57 = vpop.f32.mrf.mxu1 }
 0x25d   : > { %2155 = vst.msk [vmem:[%s3521_s22 + $0xa0] sm:$0xff] %vm411_vm0, %v1980_v55  ;;  %v1983_v31 = vadd.f32 %v2142_v19, %v1924_v29  ;;  %v1916_v14 = vadd.f32 %v3512_v34, %v1915_v57 }
 0x25f   : > { %2158 = vst.msk [vmem:[%s3521_s22 + $0xb8] sm:$0xff] %vm411_vm0, %v1983_v31  ;;  %v1981_v48 = vadd.f32 %v2140_v51, %v1916_v14 }
 0x261   : > { %2156 = vst.msk [vmem:[%s3521_s22 + $0xa8] sm:$0xff] %vm411_vm0, %v1981_v48 }
 0x269   : > { %v2318_v9 = vpop.f32.mrf.mxu1 }
 0x26a   : > { %v1937_v7 = vadd.f32 %v2318_v9, %v3512_v34 }
 0x26b   : > { %v1928_v47 = vpop.f32.mrf.mxu1 }
 0x26c   : > { %v1986_v3 = vadd.f32 %v2145_v4, %v1937_v7  ;;  %v1929_v5 = vadd.f32 %v3512_v34, %v1928_v47 }
 0x26d   : > { %v2319_v12 = vpop.f32.mrf.mxu1 }
 0x26e   : > { %2161 = vst.msk [vmem:[%s3521_s22 + $0xd0] sm:$0xff] %vm411_vm0, %v1986_v3  ;;  %v1984_v10 = vadd.f32 %v2143_v1, %v1929_v5  ;;  %v1940_v36 = vadd.f32 %v2319_v12, %v3512_v34 }
 0x26f   : > { %v1931_v30 = vpop.f32.mrf.mxu1 }
 0x270   : > { %2159 = vst.msk [vmem:[%s3521_s22 + $0xc0] sm:$0xff] %vm411_vm0, %v1984_v10  ;;  %v1987_v6 = vadd.f32 %v2146_v38, %v1940_v36  ;;  %v1932_v28 = vadd.f32 %v3512_v34, %v1931_v30 }
 0x272   : > { %2162 = vst.msk [vmem:[%s3521_s22 + $0xd8] sm:$0xff] %vm411_vm0, %v1987_v6  ;;  %v1985_v40 = vadd.f32 %v2144_v61, %v1932_v28 }
 0x274   : > { %2160 = vst.msk [vmem:[%s3521_s22 + $0xc8] sm:$0xff] %vm411_vm0, %v1985_v40 }
 0x27c   : > { %v2322_v49 = vpop.f32.mrf.mxu1 }
 0x27d   : > { %v1953_v25 = vadd.f32 %v2322_v49, %v3512_v34 }
 0x27e   : > { %v1944_v35 = vpop.f32.mrf.mxu1 }
 0x27f   : > { %v1990_v45 = vadd.f32 %v2149_v24, %v1953_v25  ;;  %v1945_v33 = vadd.f32 %v3512_v34, %v1944_v35 }
 0x280   : > { %v2323_v42 = vpop.f32.mrf.mxu1 }
 0x281   : > { %2165 = vst.msk [vmem:[%s3521_s22 + $0xf0] sm:$0xff] %vm411_vm0, %v1990_v45  ;;  %v1988_v62 = vadd.f32 %v2147_v18, %v1945_v33  ;;  %v1956_v39 = vadd.f32 %v2323_v42, %v3512_v34 }
 0x282   : > { %v1947_v17 = vpop.f32.mrf.mxu1 }
 0x283   : > { %2163 = vst.msk [vmem:[%s3521_s22 + $0xe0] sm:$0xff] %vm411_vm0, %v1988_v62  ;;  %v1991_v16 = vadd.f32 %v2150_v27, %v1956_v39  ;;  %v1948_v13 = vadd.f32 %v3512_v34, %v1947_v17 }
 0x285   : > { %2166 = vst.msk [vmem:[%s3521_s22 + $0xf8] sm:$0xff] %vm411_vm0, %v1991_v16  ;;  %v1989_v43 = vadd.f32 %v2148_v37, %v1948_v13 }
 0x287   : > { %2164 = vst.msk [vmem:[%s3521_s22 + $0xe8] sm:$0xff] %vm411_vm0, %v1989_v43 }
 0x288   : > { %2445 = shalt.err (!%p2442_p10)
}
 0x289   : > { %s2446_s16 = scalar_lea.hbm %s3647_s19, 4096  ;;  %s2450_s22 = scalar_lea.hbm %s3703_s7, 8192 }
 0x28a   : > { %p2447_p0 = scmp.ne.s32.totalorder %s3647_s19, %s2446_s16  ;;  %p2451_p1 = scmp.lt.s32.totalorder %s3647_s19, %s3703_s7 }
 0x28b   : > { %p2452_p3 = scmp.lt.s32.totalorder %s2450_s22, %s2446_s16 }
 0x28c   : > { %p2448_p2 = pnand %p2447_p0, %p3732_p12 }
 0x28d   : > { %p2453_p6 = por %p2452_p3, %p2451_p1 }
 0x28e   : > { %p2449_p9 = pneg %p2448_p2 }
 0x290   : > { %p2454_p11 = pnand %p2453_p6, %p2449_p9 }
 0x292   : > { %2457 = shalt.err (!%p2454_p11)
}
 0x293   : > { %s2503_s12 = smov 128   ;;  %s2504_s15 = smov 8  }
 0x294   : > { %2342 = dma.vmem_to_hbm [thread:$0]  (%p3732_p12), %s3649_s23, 4096, %s3647_s19, %s2010_s28, %s2503_s12, %s2503_s12, %s2504_s15  }
 0x295 PF: > { %s2038_s21 = sand.u32 1, %s2484_s24   ;;  %p3733_p13 = scmp.ne.s32.totalorder %s3719_s14, 0 }
 0x296   : > { %p3734_p4 = scmp.ge.s32.totalorder %s2496_s27, 2  ;;  %s2039_s9 = scalar_lea.sflag [#allocation5], %s2038_s21 }
 0x298   : > { %p2349_p5 = pnand %p3734_p4, %p3733_p13 }
 0x29a   : > { %p2350_p7 = pneg %p2349_p5 }
 0x29c   : > { %2479 = dma.done.wait (%p2350_p7), %s2039_s9, 4096  }
 0x29d   : > { %2481 = vsyncadd (%p2350_p7), %s2039_s9, 4294963200  ;;  %p20_p8 = scmp.ge.s32.totalorder %s2570_s30, 4   ;;  %s3735_s24 = smov %s2488_s25 }
 0x29e   : > { %s3736_s25 = smov %s2492_s26  ;;  %s3737_s26 = smov %s2582_s10 }
 0x29f   : > { %s3738_s27 = smov %s2570_s30  ;;  %22 = sbr.rel (!%p20_p8) target bundleno = 5 (0x5), region = 101 }
 0x2a4   :  { %2044 = vsyncpa [#allocation4], 1 }
 0x2a5   :  { %2046 = vsyncpa [#allocation4 + $0x1], 1 }
 0x2a6   :  { %2047 = vsyncpa [#allocation5], 1 }
 0x2a7   :  { %2049 = vsyncpa [#allocation5 + $0x1], 1 }

</bundles_post_ra>
